<compile_context>
chip_gen: v7x
topology: tpu7x:2x2x1
jax: 0.10.0
libtpu: 0.0.40
codegen_flags: <defaults>
</compile_context>

<pallas_src>
import jax
import jax.numpy as jnp
from jax import lax
from jax.experimental import pallas as pl
from jax.experimental.pallas import tpu as pltpu

PADDING_IDX = 0


def _round_up(x, m):
    return ((x + m - 1) // m) * m


# ----------------------------------------------------------------------------
# Pallas kernel: one (batch-block, time-block) tile of the LSTM + masked max.
# Grid = (Bp//TB, Tp//Tc); batch axis "parallel", time axis "arbitrary".
# h/c/max scratch persist across the time axis; re-initialized at t == 0.
# ----------------------------------------------------------------------------
def _lstm_maxpool_kernel(x_ref, m_ref, wih_ref, whh_ref, b_ref, out_ref,
                         h_sc, c_sc, mx_sc, pre_sc):
    Tc, TB, Ep = x_ref.shape
    Hp = h_sc.shape[1]
    t = pl.program_id(1)

    @pl.when(t == 0)
    def _init():
        h_sc[...] = jnp.zeros(h_sc.shape, h_sc.dtype)
        c_sc[...] = jnp.zeros(c_sc.shape, c_sc.dtype)
        mx_sc[...] = jnp.full(mx_sc.shape, -jnp.inf, mx_sc.dtype)

    # Hoisted input projection for the whole time block:
    # one (Tc*TB, Ep) @ (Ep, 4Hp) bf16 MXU matmul, f32 accumulation.
    x_blk = x_ref[...].reshape(Tc * TB, Ep)
    pre_sc[...] = (jnp.dot(x_blk, wih_ref[...],
                           preferred_element_type=jnp.float32) + b_ref[...])

    whh = whh_ref[...]            # (Hp, 4Hp) bf16, resident
    h = h_sc[...]                 # (TB, Hp) f32
    c = c_sc[...]                 # (TB, Hp) f32
    mx = mx_sc[...]               # (TB, Hp) f32

    # Fully-unrolled serial recurrence over the Tc steps of this block
    # (static offsets -> aligned vector loads, full LLO scheduler visibility).
    for s in range(Tc):
        gates = (pre_sc[s * TB:(s + 1) * TB, :]
                 + jnp.dot(h.astype(whh.dtype), whh,
                           preferred_element_type=jnp.float32))
        # gate order is [i, f, o, g]: one sigmoid over 3*Hp, one tanh over Hp.
        sig = jax.nn.sigmoid(gates[:, :3 * Hp])
        g_g = jnp.tanh(gates[:, 3 * Hp:])
        i_g = sig[:, :Hp]
        f_g = sig[:, Hp:2 * Hp]
        o_g = sig[:, 2 * Hp:3 * Hp]
        c = f_g * c + i_g * g_g
        h = o_g * jnp.tanh(c)
        # mask is 0.0 (keep) or -inf (padding token) -> additive masking
        mx = jnp.maximum(mx, h + m_ref[s])

    # write state / running max only at block boundaries
    h_sc[...] = h
    c_sc[...] = c
    mx_sc[...] = mx

    @pl.when(t == pl.num_programs(1) - 1)
    def _finalize():
        out_ref[...] = mx


def laser_lstm_encoder_forward(seqs, seq_lens, params, padding_idx=PADDING_IDX):
    """seqs: (B, T) int32 token ids; seq_lens: (B,) int32 (redundant for the
    result -- trailing positions beyond each length hold padding_idx)."""
    del seq_lens  # semantically redundant given trailing padding_idx tokens

    emb_table = params["embedding"]                    # (V, E)
    w_ih, w_hh = params["w_ih"], params["w_hh"]        # (4H, E), (4H, H)
    b_sum = (params["b_ih"] + params["b_hh"]).astype(jnp.float32)  # (4H,)

    B, T = seqs.shape
    V, E = emb_table.shape
    H = w_hh.shape[1]

    # --- tile-aligned padded sizes -------------------------------------------
    Hp = _round_up(H, 128)                 # lane-aligned hidden size
    Ep = _round_up(E, 128)                 # lane-aligned embed dim
    TB = min(_round_up(B, 16), 128)        # batch tile (bf16 sublane tile)
    Bp = _round_up(B, TB)
    H4 = 4 * Hp

    # time block: as large as possible while keeping the pre-gate scratch
    # (Tc*TB, 4Hp) f32 under ~8 MiB so the whole kernel fits v7x VMEM.
    Tc = min(_round_up(T, 8), 32)
    while Tc > 8 and Tc * TB * H4 * 4 > (8 << 20):
        Tc = max(8, Tc // 2)
    Tp = _round_up(T, Tc)

    # --- gate-permuted ([i,f,g,o] -> [i,f,o,g]), zero-padded weights ---------
    gate_perm = (0, 1, 3, 2)
    wih_t = jnp.zeros((Ep, H4), jnp.float32)
    whh_t = jnp.zeros((Hp, H4), jnp.float32)
    bias = jnp.zeros((1, H4), jnp.float32)
    for k, g in enumerate(gate_perm):
        wih_t = wih_t.at[:E, k * Hp:k * Hp + H].set(
            w_ih[g * H:(g + 1) * H, :].T.astype(jnp.float32))
        whh_t = whh_t.at[:H, k * Hp:k * Hp + H].set(
            w_hh[g * H:(g + 1) * H, :].T.astype(jnp.float32))
        bias = bias.at[0, k * Hp:k * Hp + H].set(b_sum[g * H:(g + 1) * H])
    wih_bf = wih_t.astype(jnp.bfloat16)    # matmul inputs in bf16
    whh_bf = whh_t.astype(jnp.bfloat16)

    # --- tokens / activations: gather directly into time-major layout --------
    tok = jnp.full((Bp, Tp), padding_idx, jnp.int32).at[:B, :T].set(seqs)
    tok_tm = tok.T                                            # (Tp, Bp)
    emb_p = jnp.zeros((V, Ep), jnp.bfloat16).at[:, :E].set(
        emb_table.astype(jnp.bfloat16))
    x = emb_p[tok_tm]                                         # (Tp, Bp, Ep) bf16
    mask = jnp.where(tok_tm == padding_idx, -jnp.inf,
                     0.0).astype(jnp.float32)[..., None]      # (Tp, Bp, 1)

    n_bt = Bp // TB
    n_tt = Tp // Tc

    out_p = pl.pallas_call(
        _lstm_maxpool_kernel,
        out_shape=jax.ShapeDtypeStruct((Bp, Hp), jnp.float32),
        grid_spec=pltpu.PrefetchScalarGridSpec(
            num_scalar_prefetch=0,
            grid=(n_bt, n_tt),
            in_specs=[
                pl.BlockSpec((Tc, TB, Ep), lambda b, t: (t, b, 0)),   # x block
                pl.BlockSpec((Tc, TB, 1), lambda b, t: (t, b, 0)),    # mask blk
                pl.BlockSpec((Ep, H4), lambda b, t: (0, 0)),          # W_ih^T
                pl.BlockSpec((Hp, H4), lambda b, t: (0, 0)),          # W_hh^T
                pl.BlockSpec((1, H4), lambda b, t: (0, 0)),           # bias
            ],
            out_specs=pl.BlockSpec((TB, Hp), lambda b, t: (b, 0)),
            scratch_shapes=[
                pltpu.VMEM((TB, Hp), jnp.float32),        # h state
                pltpu.VMEM((TB, Hp), jnp.float32),        # c state
                pltpu.VMEM((TB, Hp), jnp.float32),        # running max
                pltpu.VMEM((Tc * TB, H4), jnp.float32),   # pre-gates (x @ W_ih)
            ],
        ),
        compiler_params=pltpu.CompilerParams(
            dimension_semantics=("parallel", "arbitrary")),
    )(x, mask, wih_bf, whh_bf, bias)

    return out_p[:B, :H]


# ----------------------------------------------------------------------------
# Pure-JAX reference (lax.scan), faithful to the PyTorch module but using the
# same mixed-precision policy as the kernel (bf16 matmul inputs, f32 state).
# ----------------------------------------------------------------------------
def reference_forward(seqs, seq_lens, params):
    del seq_lens
    emb_table = params["embedding"]
    w_ih, w_hh = params["w_ih"], params["w_hh"]
    b = (params["b_ih"] + params["b_hh"]).astype(jnp.float32)
    B, T = seqs.shape
    H = w_hh.shape[1]

    x = emb_table[seqs.T].astype(jnp.bfloat16)        # (T, B, E)
    wih_t = w_ih.T.astype(jnp.bfloat16)
    whh_t = w_hh.T.astype(jnp.bfloat16)

    def step(carry, xt):
        h, c = carry
        gates = (jnp.dot(xt, wih_t, preferred_element_type=jnp.float32)
                 + jnp.dot(h.astype(jnp.bfloat16), whh_t,
                           preferred_element_type=jnp.float32) + b)
        i = jax.nn.sigmoid(gates[:, :H])
        f = jax.nn.sigmoid(gates[:, H:2 * H])
        g = jnp.tanh(gates[:, 2 * H:3 * H])
        o = jax.nn.sigmoid(gates[:, 3 * H:])
        c = f * c + i * g
        h = o * jnp.tanh(c)
        return (h, c), h

    init = (jnp.zeros((B, H), jnp.float32), jnp.zeros((B, H), jnp.float32))
    _, hs = lax.scan(step, init, x)                         # (T, B, H)
    pad = (seqs.T == PADDING_IDX)[..., None]                # (T, B, 1)
    hs = jnp.where(pad, -jnp.inf, hs)
    return jnp.max(hs, axis=0)


# ----------------------------------------------------------------------------
# Deterministic parameter init (shapes follow the module's __init__).
# ----------------------------------------------------------------------------
def init_params(key, num_embeddings, embed_dim, hidden_size):
    k_emb, k_wih, k_whh, k_bih, k_bhh = jax.random.split(key, 5)
    scale = 1.0 / jnp.sqrt(hidden_size)
    embedding = jax.random.normal(k_emb, (num_embeddings, embed_dim),
                                  jnp.float32)
    embedding = embedding.at[PADDING_IDX].set(0.0)  # padding_idx row zeroed
    return {
        "embedding": embedding,
        "w_ih": jax.random.uniform(k_wih, (4 * hidden_size, embed_dim),
                                   jnp.float32, -scale, scale),
        "w_hh": jax.random.uniform(k_whh, (4 * hidden_size, hidden_size),
                                   jnp.float32, -scale, scale),
        "b_ih": jax.random.uniform(k_bih, (4 * hidden_size,),
                                   jnp.float32, -scale, scale),
        "b_hh": jax.random.uniform(k_bhh, (4 * hidden_size,),
                                   jnp.float32, -scale, scale),
    }


if __name__ == "__main__":
    NUM_EMBEDDINGS = 20
    EMBED_DIM = 16
    HIDDEN = 32
    B, T = 4, 8

    key = jax.random.PRNGKey(0)
    k_params, k_tok = jax.random.split(key)
    params = init_params(k_params, NUM_EMBEDDINGS, EMBED_DIM, HIDDEN)

    # tokens in [1, V); trailing positions beyond each length are padding_idx
    seqs = jax.random.randint(k_tok, (B, T), 1, NUM_EMBEDDINGS, jnp.int32)
    seq_lens = jnp.array([8, 5, 3, 6], dtype=jnp.int32)
    pos = jnp.arange(T)[None, :]
    seqs = jnp.where(pos < seq_lens[:, None], seqs, PADDING_IDX)

    out = laser_lstm_encoder_forward(seqs, seq_lens, params)
    out = jax.block_until_ready(out)

    ref = reference_forward(seqs, seq_lens, params)
    assert out.shape == (B, HIDDEN)
    assert jnp.allclose(out, ref, rtol=1e-4, atol=1e-4), (
        f"mismatch: max abs err {jnp.max(jnp.abs(out - ref))}")

    print("KERNEL_OK")
</pallas_src>

<mosaic_0001>
module attributes {stable_mosaic.version = 11 : i64} {
  func.func @_lstm_maxpool_kernel(%arg0: i32, %arg1: i32, %arg2: memref<8x16x128xbf16, #tpu.memory_space<vmem>>, %arg3: memref<8x16x1xf32, #tpu.memory_space<vmem>>, %arg4: memref<128x512xbf16, #tpu.memory_space<vmem>>, %arg5: memref<128x512xbf16, #tpu.memory_space<vmem>>, %arg6: memref<1x512xf32, #tpu.memory_space<vmem>>, %arg7: memref<16x128xf32, #tpu.memory_space<vmem>>, %arg8: memref<16x128xf32, #tpu.memory_space<vmem>>, %arg9: memref<16x128xf32, #tpu.memory_space<vmem>>, %arg10: memref<16x128xf32, #tpu.memory_space<vmem>>, %arg11: memref<128x512xf32, #tpu.memory_space<vmem>>) attributes {dimension_semantics = [#tpu.dimension_semantics<parallel>, #tpu.dimension_semantics<arbitrary>], iteration_bounds = array<i64: 1, 1>, scalar_prefetch = 0 : i64, scratch_operands = 4 : i64, tpu.core_type = #tpu.core_type<tc>, window_params = [{transform_indices = @transform_0, window_bounds = array<i64: 8, 16, 128>}, {transform_indices = @transform_1, window_bounds = array<i64: 8, 16, 1>}, {pipeline_mode = #tpu.pipeline_mode<synchronous>, transform_indices = @transform_2, window_bounds = array<i64: 128, 512>}, {pipeline_mode = #tpu.pipeline_mode<synchronous>, transform_indices = @transform_3, window_bounds = array<i64: 128, 512>}, {pipeline_mode = #tpu.pipeline_mode<synchronous>, transform_indices = @transform_4, window_bounds = array<i64: 1, 512>}, {transform_indices = @transform_5, window_bounds = array<i64: 16, 128>}]} {
    %c0_i32 = arith.constant 0 : i32
    %0 = arith.cmpi eq, %arg1, %c0_i32 : i32
    %1 = arith.extui %0 : i1 to i32
    %c0_i32_0 = arith.constant 0 : i32
    %2 = arith.cmpi ne, %1, %c0_i32_0 : i32
    scf.if %2 {
      %cst_67 = arith.constant 0.000000e+00 : f32
      %221 = vector.broadcast %cst_67 : f32 to vector<16x128xf32>
      %c0_68 = arith.constant 0 : index
      %c0_69 = arith.constant 0 : index
      %222 = vector.load %arg8[%c0_68, %c0_69] : memref<16x128xf32, #tpu.memory_space<vmem>>, vector<16x128xf32>
      tpu.vector_store %arg8[%c0_68, %c0_69], %221 {strides = array<i32>} : memref<16x128xf32, #tpu.memory_space<vmem>>, vector<16x128xf32>,
      %cst_70 = arith.constant 0.000000e+00 : f32
      %223 = vector.broadcast %cst_70 : f32 to vector<16x128xf32>
      %c0_71 = arith.constant 0 : index
      %c0_72 = arith.constant 0 : index
      %224 = vector.load %arg9[%c0_71, %c0_72] : memref<16x128xf32, #tpu.memory_space<vmem>>, vector<16x128xf32>
      tpu.vector_store %arg9[%c0_71, %c0_72], %223 {strides = array<i32>} : memref<16x128xf32, #tpu.memory_space<vmem>>, vector<16x128xf32>,
      %cst_73 = arith.constant 0xFF800000 : f32
      %225 = vector.broadcast %cst_73 : f32 to vector<16x128xf32>
      %c0_74 = arith.constant 0 : index
      %c0_75 = arith.constant 0 : index
      %226 = vector.load %arg10[%c0_74, %c0_75] : memref<16x128xf32, #tpu.memory_space<vmem>>, vector<16x128xf32>
      tpu.vector_store %arg10[%c0_74, %c0_75], %225 {strides = array<i32>} : memref<16x128xf32, #tpu.memory_space<vmem>>, vector<16x128xf32>,
    } else {
    }
    %c0 = arith.constant 0 : index
    %c0_1 = arith.constant 0 : index
    %c0_2 = arith.constant 0 : index
    %3 = vector.load %arg2[%c0, %c0_1, %c0_2] : memref<8x16x128xbf16, #tpu.memory_space<vmem>>, vector<8x16x128xbf16>
    %4 = vector.shape_cast %3 : vector<8x16x128xbf16> to vector<128x128xbf16>
    %c0_3 = arith.constant 0 : index
    %c0_4 = arith.constant 0 : index
    %5 = vector.load %arg4[%c0_3, %c0_4] : memref<128x512xbf16, #tpu.memory_space<vmem>>, vector<128x512xbf16>
    %cst = arith.constant dense<0.000000e+00> : vector<128x512xf32>
    %6 = tpu.matmul %4, %5, %cst {dimension_numbers = #tpu.dot_dimension_numbers<[1], [0], [0], [1], [0, 0, 1, 1], [], []>} : vector<128x128xbf16>, vector<128x512xbf16>, vector<128x512xf32> -> vector<128x512xf32>
    %c0_5 = arith.constant 0 : index
    %c0_6 = arith.constant 0 : index
    %7 = vector.load %arg6[%c0_5, %c0_6] : memref<1x512xf32, #tpu.memory_space<vmem>>, vector<1x512xf32>
    %8 = vector.broadcast %7 : vector<1x512xf32> to vector<128x512xf32>
    %9 = arith.addf %6, %8 : vector<128x512xf32>
    %c0_7 = arith.constant 0 : index
    %c0_8 = arith.constant 0 : index
    %10 = vector.load %arg11[%c0_7, %c0_8] : memref<128x512xf32, #tpu.memory_space<vmem>>, vector<128x512xf32>
    tpu.vector_store %arg11[%c0_7, %c0_8], %9 {strides = array<i32>} : memref<128x512xf32, #tpu.memory_space<vmem>>, vector<128x512xf32>,
    %c0_9 = arith.constant 0 : index
    %c0_10 = arith.constant 0 : index
    %11 = vector.load %arg5[%c0_9, %c0_10] : memref<128x512xbf16, #tpu.memory_space<vmem>>, vector<128x512xbf16>
    %c0_11 = arith.constant 0 : index
    %c0_12 = arith.constant 0 : index
    %12 = vector.load %arg8[%c0_11, %c0_12] : memref<16x128xf32, #tpu.memory_space<vmem>>, vector<16x128xf32>
    %c0_13 = arith.constant 0 : index
    %c0_14 = arith.constant 0 : index
    %13 = vector.load %arg9[%c0_13, %c0_14] : memref<16x128xf32, #tpu.memory_space<vmem>>, vector<16x128xf32>
    %c0_15 = arith.constant 0 : index
    %c0_16 = arith.constant 0 : index
    %14 = vector.load %arg10[%c0_15, %c0_16] : memref<16x128xf32, #tpu.memory_space<vmem>>, vector<16x128xf32>
    %c0_17 = arith.constant 0 : index
    %c0_18 = arith.constant 0 : index
    %15 = vector.load %arg11[%c0_17, %c0_18] : memref<128x512xf32, #tpu.memory_space<vmem>>, vector<16x512xf32>
    %16 = arith.truncf %12 : vector<16x128xf32> to vector<16x128xbf16>
    %cst_19 = arith.constant dense<0.000000e+00> : vector<16x512xf32>
    %17 = tpu.matmul %16, %11, %cst_19 {dimension_numbers = #tpu.dot_dimension_numbers<[1], [0], [0], [1], [0, 0, 1, 1], [], []>} : vector<16x128xbf16>, vector<128x512xbf16>, vector<16x512xf32> -> vector<16x512xf32>
    %18 = arith.addf %15, %17 : vector<16x512xf32>
    %19 = vector.extract_strided_slice %18 {offsets = [0, 0], sizes = [16, 384], strides = [1, 1]} : vector<16x512xf32> to vector<16x384xf32>
    %20 = arith.negf %19 : vector<16x384xf32>
    %21 = math.exp %20 : vector<16x384xf32>
    %cst_20 = arith.constant 1.000000e+00 : f32
    %22 = vector.broadcast %cst_20 : f32 to vector<16x384xf32>
    %23 = arith.addf %22, %21 : vector<16x384xf32>
    %24 = arith.divf %22, %23 : vector<16x384xf32>
    %25 = vector.extract_strided_slice %18 {offsets = [0, 384], sizes = [16, 128], strides = [1, 1]} : vector<16x512xf32> to vector<16x128xf32>
    %26 = math.tanh %25 : vector<16x128xf32>
    %27 = vector.extract_strided_slice %24 {offsets = [0, 0], sizes = [16, 128], strides = [1, 1]} : vector<16x384xf32> to vector<16x128xf32>
    %28 = vector.extract_strided_slice %24 {offsets = [0, 128], sizes = [16, 128], strides = [1, 1]} : vector<16x384xf32> to vector<16x128xf32>
    %29 = vector.extract_strided_slice %24 {offsets = [0, 256], sizes = [16, 128], strides = [1, 1]} : vector<16x384xf32> to vector<16x128xf32>
    %30 = arith.mulf %28, %13 : vector<16x128xf32>
    %31 = arith.mulf %27, %26 : vector<16x128xf32>
    %32 = arith.addf %30, %31 : vector<16x128xf32>
    %33 = math.tanh %32 : vector<16x128xf32>
    %34 = arith.mulf %29, %33 : vector<16x128xf32>
    %c0_21 = arith.constant 0 : index
    %c0_22 = arith.constant 0 : index
    %c0_23 = arith.constant 0 : index
    %35 = vector.load %arg3[%c0_21, %c0_22, %c0_23] : memref<8x16x1xf32, #tpu.memory_space<vmem>>, vector<1x16x1xf32>
    %36 = vector.shape_cast %35 : vector<1x16x1xf32> to vector<16x1xf32>
    %37 = vector.broadcast %36 : vector<16x1xf32> to vector<16x128xf32>
    %38 = arith.addf %34, %37 : vector<16x128xf32>
    %39 = arith.maximumf %14, %38 : vector<16x128xf32>
    %c16 = arith.constant 16 : index
    %c0_24 = arith.constant 0 : index
    %40 = vector.load %arg11[%c16, %c0_24] : memref<128x512xf32, #tpu.memory_space<vmem>>, vector<16x512xf32>
    %41 = arith.truncf %34 : vector<16x128xf32> to vector<16x128xbf16>
    %cst_25 = arith.constant dense<0.000000e+00> : vector<16x512xf32>
    %42 = tpu.matmul %41, %11, %cst_25 {dimension_numbers = #tpu.dot_dimension_numbers<[1], [0], [0], [1], [0, 0, 1, 1], [], []>} : vector<16x128xbf16>, vector<128x512xbf16>, vector<16x512xf32> -> vector<16x512xf32>
    %43 = arith.addf %40, %42 : vector<16x512xf32>
    %44 = vector.extract_strided_slice %43 {offsets = [0, 0], sizes = [16, 384], strides = [1, 1]} : vector<16x512xf32> to vector<16x384xf32>
    %45 = arith.negf %44 : vector<16x384xf32>
    %46 = math.exp %45 : vector<16x384xf32>
    %cst_26 = arith.constant 1.000000e+00 : f32
    %47 = vector.broadcast %cst_26 : f32 to vector<16x384xf32>
    %48 = arith.addf %47, %46 : vector<16x384xf32>
    %49 = arith.divf %47, %48 : vector<16x384xf32>
    %50 = vector.extract_strided_slice %43 {offsets = [0, 384], sizes = [16, 128], strides = [1, 1]} : vector<16x512xf32> to vector<16x128xf32>
    %51 = math.tanh %50 : vector<16x128xf32>
    %52 = vector.extract_strided_slice %49 {offsets = [0, 0], sizes = [16, 128], strides = [1, 1]} : vector<16x384xf32> to vector<16x128xf32>
    %53 = vector.extract_strided_slice %49 {offsets = [0, 128], sizes = [16, 128], strides = [1, 1]} : vector<16x384xf32> to vector<16x128xf32>
    %54 = vector.extract_strided_slice %49 {offsets = [0, 256], sizes = [16, 128], strides = [1, 1]} : vector<16x384xf32> to vector<16x128xf32>
    %55 = arith.mulf %53, %32 : vector<16x128xf32>
    %56 = arith.mulf %52, %51 : vector<16x128xf32>
    %57 = arith.addf %55, %56 : vector<16x128xf32>
    %58 = math.tanh %57 : vector<16x128xf32>
    %59 = arith.mulf %54, %58 : vector<16x128xf32>
    %c1 = arith.constant 1 : index
    %c0_27 = arith.constant 0 : index
    %c0_28 = arith.constant 0 : index
    %60 = vector.load %arg3[%c1, %c0_27, %c0_28] : memref<8x16x1xf32, #tpu.memory_space<vmem>>, vector<1x16x1xf32>
    %61 = vector.shape_cast %60 : vector<1x16x1xf32> to vector<16x1xf32>
    %62 = vector.broadcast %61 : vector<16x1xf32> to vector<16x128xf32>
    %63 = arith.addf %59, %62 : vector<16x128xf32>
    %64 = arith.maximumf %39, %63 : vector<16x128xf32>
    %c32 = arith.constant 32 : index
    %c0_29 = arith.constant 0 : index
    %65 = vector.load %arg11[%c32, %c0_29] : memref<128x512xf32, #tpu.memory_space<vmem>>, vector<16x512xf32>
    %66 = arith.truncf %59 : vector<16x128xf32> to vector<16x128xbf16>
    %cst_30 = arith.constant dense<0.000000e+00> : vector<16x512xf32>
    %67 = tpu.matmul %66, %11, %cst_30 {dimension_numbers = #tpu.dot_dimension_numbers<[1], [0], [0], [1], [0, 0, 1, 1], [], []>} : vector<16x128xbf16>, vector<128x512xbf16>, vector<16x512xf32> -> vector<16x512xf32>
    %68 = arith.addf %65, %67 : vector<16x512xf32>
    %69 = vector.extract_strided_slice %68 {offsets = [0, 0], sizes = [16, 384], strides = [1, 1]} : vector<16x512xf32> to vector<16x384xf32>
    %70 = arith.negf %69 : vector<16x384xf32>
    %71 = math.exp %70 : vector<16x384xf32>
    %cst_31 = arith.constant 1.000000e+00 : f32
    %72 = vector.broadcast %cst_31 : f32 to vector<16x384xf32>
    %73 = arith.addf %72, %71 : vector<16x384xf32>
    %74 = arith.divf %72, %73 : vector<16x384xf32>
    %75 = vector.extract_strided_slice %68 {offsets = [0, 384], sizes = [16, 128], strides = [1, 1]} : vector<16x512xf32> to vector<16x128xf32>
    %76 = math.tanh %75 : vector<16x128xf32>
    %77 = vector.extract_strided_slice %74 {offsets = [0, 0], sizes = [16, 128], strides = [1, 1]} : vector<16x384xf32> to vector<16x128xf32>
    %78 = vector.extract_strided_slice %74 {offsets = [0, 128], sizes = [16, 128], strides = [1, 1]} : vector<16x384xf32> to vector<16x128xf32>
    %79 = vector.extract_strided_slice %74 {offsets = [0, 256], sizes = [16, 128], strides = [1, 1]} : vector<16x384xf32> to vector<16x128xf32>
    %80 = arith.mulf %78, %57 : vector<16x128xf32>
    %81 = arith.mulf %77, %76 : vector<16x128xf32>
    %82 = arith.addf %80, %81 : vector<16x128xf32>
    %83 = math.tanh %82 : vector<16x128xf32>
    %84 = arith.mulf %79, %83 : vector<16x128xf32>
    %c2 = arith.constant 2 : index
    %c0_32 = arith.constant 0 : index
    %c0_33 = arith.constant 0 : index
    %85 = vector.load %arg3[%c2, %c0_32, %c0_33] : memref<8x16x1xf32, #tpu.memory_space<vmem>>, vector<1x16x1xf32>
    %86 = vector.shape_cast %85 : vector<1x16x1xf32> to vector<16x1xf32>
    %87 = vector.broadcast %86 : vector<16x1xf32> to vector<16x128xf32>
    %88 = arith.addf %84, %87 : vector<16x128xf32>
    %89 = arith.maximumf %64, %88 : vector<16x128xf32>
    %c48 = arith.constant 48 : index
    %c0_34 = arith.constant 0 : index
    %90 = vector.load %arg11[%c48, %c0_34] : memref<128x512xf32, #tpu.memory_space<vmem>>, vector<16x512xf32>
    %91 = arith.truncf %84 : vector<16x128xf32> to vector<16x128xbf16>
    %cst_35 = arith.constant dense<0.000000e+00> : vector<16x512xf32>
    %92 = tpu.matmul %91, %11, %cst_35 {dimension_numbers = #tpu.dot_dimension_numbers<[1], [0], [0], [1], [0, 0, 1, 1], [], []>} : vector<16x128xbf16>, vector<128x512xbf16>, vector<16x512xf32> -> vector<16x512xf32>
    %93 = arith.addf %90, %92 : vector<16x512xf32>
    %94 = vector.extract_strided_slice %93 {offsets = [0, 0], sizes = [16, 384], strides = [1, 1]} : vector<16x512xf32> to vector<16x384xf32>
    %95 = arith.negf %94 : vector<16x384xf32>
    %96 = math.exp %95 : vector<16x384xf32>
    %cst_36 = arith.constant 1.000000e+00 : f32
    %97 = vector.broadcast %cst_36 : f32 to vector<16x384xf32>
    %98 = arith.addf %97, %96 : vector<16x384xf32>
    %99 = arith.divf %97, %98 : vector<16x384xf32>
    %100 = vector.extract_strided_slice %93 {offsets = [0, 384], sizes = [16, 128], strides = [1, 1]} : vector<16x512xf32> to vector<16x128xf32>
    %101 = math.tanh %100 : vector<16x128xf32>
    %102 = vector.extract_strided_slice %99 {offsets = [0, 0], sizes = [16, 128], strides = [1, 1]} : vector<16x384xf32> to vector<16x128xf32>
    %103 = vector.extract_strided_slice %99 {offsets = [0, 128], sizes = [16, 128], strides = [1, 1]} : vector<16x384xf32> to vector<16x128xf32>
    %104 = vector.extract_strided_slice %99 {offsets = [0, 256], sizes = [16, 128], strides = [1, 1]} : vector<16x384xf32> to vector<16x128xf32>
    %105 = arith.mulf %103, %82 : vector<16x128xf32>
    %106 = arith.mulf %102, %101 : vector<16x128xf32>
    %107 = arith.addf %105, %106 : vector<16x128xf32>
    %108 = math.tanh %107 : vector<16x128xf32>
    %109 = arith.mulf %104, %108 : vector<16x128xf32>
    %c3 = arith.constant 3 : index
    %c0_37 = arith.constant 0 : index
    %c0_38 = arith.constant 0 : index
    %110 = vector.load %arg3[%c3, %c0_37, %c0_38] : memref<8x16x1xf32, #tpu.memory_space<vmem>>, vector<1x16x1xf32>
    %111 = vector.shape_cast %110 : vector<1x16x1xf32> to vector<16x1xf32>
    %112 = vector.broadcast %111 : vector<16x1xf32> to vector<16x128xf32>
    %113 = arith.addf %109, %112 : vector<16x128xf32>
    %114 = arith.maximumf %89, %113 : vector<16x128xf32>
    %c64 = arith.constant 64 : index
    %c0_39 = arith.constant 0 : index
    %115 = vector.load %arg11[%c64, %c0_39] : memref<128x512xf32, #tpu.memory_space<vmem>>, vector<16x512xf32>
    %116 = arith.truncf %109 : vector<16x128xf32> to vector<16x128xbf16>
    %cst_40 = arith.constant dense<0.000000e+00> : vector<16x512xf32>
    %117 = tpu.matmul %116, %11, %cst_40 {dimension_numbers = #tpu.dot_dimension_numbers<[1], [0], [0], [1], [0, 0, 1, 1], [], []>} : vector<16x128xbf16>, vector<128x512xbf16>, vector<16x512xf32> -> vector<16x512xf32>
    %118 = arith.addf %115, %117 : vector<16x512xf32>
    %119 = vector.extract_strided_slice %118 {offsets = [0, 0], sizes = [16, 384], strides = [1, 1]} : vector<16x512xf32> to vector<16x384xf32>
    %120 = arith.negf %119 : vector<16x384xf32>
    %121 = math.exp %120 : vector<16x384xf32>
    %cst_41 = arith.constant 1.000000e+00 : f32
    %122 = vector.broadcast %cst_41 : f32 to vector<16x384xf32>
    %123 = arith.addf %122, %121 : vector<16x384xf32>
    %124 = arith.divf %122, %123 : vector<16x384xf32>
    %125 = vector.extract_strided_slice %118 {offsets = [0, 384], sizes = [16, 128], strides = [1, 1]} : vector<16x512xf32> to vector<16x128xf32>
    %126 = math.tanh %125 : vector<16x128xf32>
    %127 = vector.extract_strided_slice %124 {offsets = [0, 0], sizes = [16, 128], strides = [1, 1]} : vector<16x384xf32> to vector<16x128xf32>
    %128 = vector.extract_strided_slice %124 {offsets = [0, 128], sizes = [16, 128], strides = [1, 1]} : vector<16x384xf32> to vector<16x128xf32>
    %129 = vector.extract_strided_slice %124 {offsets = [0, 256], sizes = [16, 128], strides = [1, 1]} : vector<16x384xf32> to vector<16x128xf32>
    %130 = arith.mulf %128, %107 : vector<16x128xf32>
    %131 = arith.mulf %127, %126 : vector<16x128xf32>
    %132 = arith.addf %130, %131 : vector<16x128xf32>
    %133 = math.tanh %132 : vector<16x128xf32>
    %134 = arith.mulf %129, %133 : vector<16x128xf32>
    %c4 = arith.constant 4 : index
    %c0_42 = arith.constant 0 : index
    %c0_43 = arith.constant 0 : index
    %135 = vector.load %arg3[%c4, %c0_42, %c0_43] : memref<8x16x1xf32, #tpu.memory_space<vmem>>, vector<1x16x1xf32>
    %136 = vector.shape_cast %135 : vector<1x16x1xf32> to vector<16x1xf32>
    %137 = vector.broadcast %136 : vector<16x1xf32> to vector<16x128xf32>
    %138 = arith.addf %134, %137 : vector<16x128xf32>
    %139 = arith.maximumf %114, %138 : vector<16x128xf32>
    %c80 = arith.constant 80 : index
    %c0_44 = arith.constant 0 : index
    %140 = vector.load %arg11[%c80, %c0_44] : memref<128x512xf32, #tpu.memory_space<vmem>>, vector<16x512xf32>
    %141 = arith.truncf %134 : vector<16x128xf32> to vector<16x128xbf16>
    %cst_45 = arith.constant dense<0.000000e+00> : vector<16x512xf32>
    %142 = tpu.matmul %141, %11, %cst_45 {dimension_numbers = #tpu.dot_dimension_numbers<[1], [0], [0], [1], [0, 0, 1, 1], [], []>} : vector<16x128xbf16>, vector<128x512xbf16>, vector<16x512xf32> -> vector<16x512xf32>
    %143 = arith.addf %140, %142 : vector<16x512xf32>
    %144 = vector.extract_strided_slice %143 {offsets = [0, 0], sizes = [16, 384], strides = [1, 1]} : vector<16x512xf32> to vector<16x384xf32>
    %145 = arith.negf %144 : vector<16x384xf32>
    %146 = math.exp %145 : vector<16x384xf32>
    %cst_46 = arith.constant 1.000000e+00 : f32
    %147 = vector.broadcast %cst_46 : f32 to vector<16x384xf32>
    %148 = arith.addf %147, %146 : vector<16x384xf32>
    %149 = arith.divf %147, %148 : vector<16x384xf32>
    %150 = vector.extract_strided_slice %143 {offsets = [0, 384], sizes = [16, 128], strides = [1, 1]} : vector<16x512xf32> to vector<16x128xf32>
    %151 = math.tanh %150 : vector<16x128xf32>
    %152 = vector.extract_strided_slice %149 {offsets = [0, 0], sizes = [16, 128], strides = [1, 1]} : vector<16x384xf32> to vector<16x128xf32>
    %153 = vector.extract_strided_slice %149 {offsets = [0, 128], sizes = [16, 128], strides = [1, 1]} : vector<16x384xf32> to vector<16x128xf32>
    %154 = vector.extract_strided_slice %149 {offsets = [0, 256], sizes = [16, 128], strides = [1, 1]} : vector<16x384xf32> to vector<16x128xf32>
    %155 = arith.mulf %153, %132 : vector<16x128xf32>
    %156 = arith.mulf %152, %151 : vector<16x128xf32>
    %157 = arith.addf %155, %156 : vector<16x128xf32>
    %158 = math.tanh %157 : vector<16x128xf32>
    %159 = arith.mulf %154, %158 : vector<16x128xf32>
    %c5 = arith.constant 5 : index
    %c0_47 = arith.constant 0 : index
    %c0_48 = arith.constant 0 : index
    %160 = vector.load %arg3[%c5, %c0_47, %c0_48] : memref<8x16x1xf32, #tpu.memory_space<vmem>>, vector<1x16x1xf32>
    %161 = vector.shape_cast %160 : vector<1x16x1xf32> to vector<16x1xf32>
    %162 = vector.broadcast %161 : vector<16x1xf32> to vector<16x128xf32>
    %163 = arith.addf %159, %162 : vector<16x128xf32>
    %164 = arith.maximumf %139, %163 : vector<16x128xf32>
    %c96 = arith.constant 96 : index
    %c0_49 = arith.constant 0 : index
    %165 = vector.load %arg11[%c96, %c0_49] : memref<128x512xf32, #tpu.memory_space<vmem>>, vector<16x512xf32>
    %166 = arith.truncf %159 : vector<16x128xf32> to vector<16x128xbf16>
    %cst_50 = arith.constant dense<0.000000e+00> : vector<16x512xf32>
    %167 = tpu.matmul %166, %11, %cst_50 {dimension_numbers = #tpu.dot_dimension_numbers<[1], [0], [0], [1], [0, 0, 1, 1], [], []>} : vector<16x128xbf16>, vector<128x512xbf16>, vector<16x512xf32> -> vector<16x512xf32>
    %168 = arith.addf %165, %167 : vector<16x512xf32>
    %169 = vector.extract_strided_slice %168 {offsets = [0, 0], sizes = [16, 384], strides = [1, 1]} : vector<16x512xf32> to vector<16x384xf32>
    %170 = arith.negf %169 : vector<16x384xf32>
    %171 = math.exp %170 : vector<16x384xf32>
    %cst_51 = arith.constant 1.000000e+00 : f32
    %172 = vector.broadcast %cst_51 : f32 to vector<16x384xf32>
    %173 = arith.addf %172, %171 : vector<16x384xf32>
    %174 = arith.divf %172, %173 : vector<16x384xf32>
    %175 = vector.extract_strided_slice %168 {offsets = [0, 384], sizes = [16, 128], strides = [1, 1]} : vector<16x512xf32> to vector<16x128xf32>
    %176 = math.tanh %175 : vector<16x128xf32>
    %177 = vector.extract_strided_slice %174 {offsets = [0, 0], sizes = [16, 128], strides = [1, 1]} : vector<16x384xf32> to vector<16x128xf32>
    %178 = vector.extract_strided_slice %174 {offsets = [0, 128], sizes = [16, 128], strides = [1, 1]} : vector<16x384xf32> to vector<16x128xf32>
    %179 = vector.extract_strided_slice %174 {offsets = [0, 256], sizes = [16, 128], strides = [1, 1]} : vector<16x384xf32> to vector<16x128xf32>
    %180 = arith.mulf %178, %157 : vector<16x128xf32>
    %181 = arith.mulf %177, %176 : vector<16x128xf32>
    %182 = arith.addf %180, %181 : vector<16x128xf32>
    %183 = math.tanh %182 : vector<16x128xf32>
    %184 = arith.mulf %179, %183 : vector<16x128xf32>
    %c6 = arith.constant 6 : index
    %c0_52 = arith.constant 0 : index
    %c0_53 = arith.constant 0 : index
    %185 = vector.load %arg3[%c6, %c0_52, %c0_53] : memref<8x16x1xf32, #tpu.memory_space<vmem>>, vector<1x16x1xf32>
    %186 = vector.shape_cast %185 : vector<1x16x1xf32> to vector<16x1xf32>
    %187 = vector.broadcast %186 : vector<16x1xf32> to vector<16x128xf32>
    %188 = arith.addf %184, %187 : vector<16x128xf32>
    %189 = arith.maximumf %164, %188 : vector<16x128xf32>
    %c112 = arith.constant 112 : index
    %c0_54 = arith.constant 0 : index
    %190 = vector.load %arg11[%c112, %c0_54] : memref<128x512xf32, #tpu.memory_space<vmem>>, vector<16x512xf32>
    %191 = arith.truncf %184 : vector<16x128xf32> to vector<16x128xbf16>
    %cst_55 = arith.constant dense<0.000000e+00> : vector<16x512xf32>
    %192 = tpu.matmul %191, %11, %cst_55 {dimension_numbers = #tpu.dot_dimension_numbers<[1], [0], [0], [1], [0, 0, 1, 1], [], []>} : vector<16x128xbf16>, vector<128x512xbf16>, vector<16x512xf32> -> vector<16x512xf32>
    %193 = arith.addf %190, %192 : vector<16x512xf32>
    %194 = vector.extract_strided_slice %193 {offsets = [0, 0], sizes = [16, 384], strides = [1, 1]} : vector<16x512xf32> to vector<16x384xf32>
    %195 = arith.negf %194 : vector<16x384xf32>
    %196 = math.exp %195 : vector<16x384xf32>
    %cst_56 = arith.constant 1.000000e+00 : f32
    %197 = vector.broadcast %cst_56 : f32 to vector<16x384xf32>
    %198 = arith.addf %197, %196 : vector<16x384xf32>
    %199 = arith.divf %197, %198 : vector<16x384xf32>
    %200 = vector.extract_strided_slice %193 {offsets = [0, 384], sizes = [16, 128], strides = [1, 1]} : vector<16x512xf32> to vector<16x128xf32>
    %201 = math.tanh %200 : vector<16x128xf32>
    %202 = vector.extract_strided_slice %199 {offsets = [0, 0], sizes = [16, 128], strides = [1, 1]} : vector<16x384xf32> to vector<16x128xf32>
    %203 = vector.extract_strided_slice %199 {offsets = [0, 128], sizes = [16, 128], strides = [1, 1]} : vector<16x384xf32> to vector<16x128xf32>
    %204 = vector.extract_strided_slice %199 {offsets = [0, 256], sizes = [16, 128], strides = [1, 1]} : vector<16x384xf32> to vector<16x128xf32>
    %205 = arith.mulf %203, %182 : vector<16x128xf32>
    %206 = arith.mulf %202, %201 : vector<16x128xf32>
    %207 = arith.addf %205, %206 : vector<16x128xf32>
    %208 = math.tanh %207 : vector<16x128xf32>
    %209 = arith.mulf %204, %208 : vector<16x128xf32>
    %c7 = arith.constant 7 : index
    %c0_57 = arith.constant 0 : index
    %c0_58 = arith.constant 0 : index
    %210 = vector.load %arg3[%c7, %c0_57, %c0_58] : memref<8x16x1xf32, #tpu.memory_space<vmem>>, vector<1x16x1xf32>
    %211 = vector.shape_cast %210 : vector<1x16x1xf32> to vector<16x1xf32>
    %212 = vector.broadcast %211 : vector<16x1xf32> to vector<16x128xf32>
    %213 = arith.addf %209, %212 : vector<16x128xf32>
    %214 = arith.maximumf %189, %213 : vector<16x128xf32>
    %c0_59 = arith.constant 0 : index
    %c0_60 = arith.constant 0 : index
    %215 = vector.load %arg8[%c0_59, %c0_60] : memref<16x128xf32, #tpu.memory_space<vmem>>, vector<16x128xf32>
    tpu.vector_store %arg8[%c0_59, %c0_60], %209 {strides = array<i32>} : memref<16x128xf32, #tpu.memory_space<vmem>>, vector<16x128xf32>,
    %c0_61 = arith.constant 0 : index
    %c0_62 = arith.constant 0 : index
    %216 = vector.load %arg9[%c0_61, %c0_62] : memref<16x128xf32, #tpu.memory_space<vmem>>, vector<16x128xf32>
    tpu.vector_store %arg9[%c0_61, %c0_62], %207 {strides = array<i32>} : memref<16x128xf32, #tpu.memory_space<vmem>>, vector<16x128xf32>,
    %c0_63 = arith.constant 0 : index
    %c0_64 = arith.constant 0 : index
    %217 = vector.load %arg10[%c0_63, %c0_64] : memref<16x128xf32, #tpu.memory_space<vmem>>, vector<16x128xf32>
    tpu.vector_store %arg10[%c0_63, %c0_64], %214 {strides = array<i32>} : memref<16x128xf32, #tpu.memory_space<vmem>>, vector<16x128xf32>,
    %c0_i32_65 = arith.constant 0 : i32
    %218 = arith.cmpi eq, %arg1, %c0_i32_65 : i32
    %219 = arith.extui %218 : i1 to i32
    %c0_i32_66 = arith.constant 0 : i32
    %220 = arith.cmpi ne, %219, %c0_i32_66 : i32
    scf.if %220 {
      %c0_67 = arith.constant 0 : index
      %c0_68 = arith.constant 0 : index
      %221 = vector.load %arg7[%c0_67, %c0_68] : memref<16x128xf32, #tpu.memory_space<vmem>>, vector<16x128xf32>
      tpu.vector_store %arg7[%c0_67, %c0_68], %214 {strides = array<i32>} : memref<16x128xf32, #tpu.memory_space<vmem>>, vector<16x128xf32>,
    } else {
    }
    return
  }
  func.func @transform_0(%arg0: i32, %arg1: i32) -> (i32, i32, i32) {
    %c0_i32 = arith.constant 0 : i32
    %c0_i32_0 = arith.constant 0 : i32
    return %arg1, %arg0, %c0_i32 : i32, i32, i32
  }
  func.func @transform_1(%arg0: i32, %arg1: i32) -> (i32, i32, i32) {
    %c0_i32 = arith.constant 0 : i32
    %c0_i32_0 = arith.constant 0 : i32
    return %arg1, %arg0, %c0_i32 : i32, i32, i32
  }
  func.func @transform_2(%arg0: i32, %arg1: i32) -> (i32, i32) {
    %c0_i32 = arith.constant 0 : i32
    %c0_i32_0 = arith.constant 0 : i32
    %c0_i32_1 = arith.constant 0 : i32
    return %c0_i32, %c0_i32_0 : i32, i32
  }
  func.func @transform_3(%arg0: i32, %arg1: i32) -> (i32, i32) {
    %c0_i32 = arith.constant 0 : i32
    %c0_i32_0 = arith.constant 0 : i32
    %c0_i32_1 = arith.constant 0 : i32
    return %c0_i32, %c0_i32_0 : i32, i32
  }
  func.func @transform_4(%arg0: i32, %arg1: i32) -> (i32, i32) {
    %c0_i32 = arith.constant 0 : i32
    %c0_i32_0 = arith.constant 0 : i32
    %c0_i32_1 = arith.constant 0 : i32
    return %c0_i32, %c0_i32_0 : i32, i32
  }
  func.func @transform_5(%arg0: i32, %arg1: i32) -> (i32, i32) {
    %c0_i32 = arith.constant 0 : i32
    %c0_i32_0 = arith.constant 0 : i32
    return %arg0, %c0_i32 : i32, i32
  }
}

</mosaic_0001>

<bundles_post_ra>
// kernel: tpu_custom_call.1
= control target key start
LH: loop header
LB: loop body
LE: loop exit
PB: predicated region body
PF: predicated region fallthrough
CT: control target
= control target key end

     0   :  { %10 = vsyncpa [#allocation7], 0  ;;  %s3699_s0 = inlined_call_operand.vmem [shape: bf16[8,16,128], index: 0, kind: input, shape index: {}]   ;;  %s3700_s1 = inlined_call_operand.vmem [shape: f32[8,16,1], index: 1, kind: input, shape index: {}]   ;;  %s3701_s2 = inlined_call_operand.hbm [shape: bf16[128,512], index: 2, kind: input, shape index: {}]   ;;  %s3702_s3 = inlined_call_operand.hbm [shape: bf16[128,512], index: 3, kind: input, shape index: {}]   ;;  %s3703_s4 = inlined_call_operand.vmem [shape: f32[1,512], index: 4, kind: input, shape index: {}]   ;;  %s3704_s5 = inlined_call_operand.hbm [shape: f32[16,128], index: 5, kind: output, shape index: {}]  }
   0x1   :  { %11 = vsyncpa [#allocation10], 0 }
   0x2   :  { %12 = vsyncpa [#allocation8], 0  ;;  %s2935_s18 = smov [#allocation6]   ;;  %s2863_s22 = scalar_lea.hbm %s3701_s2, 4096 }
   0x3   :  { %s22_s19 = sshll.u32 %s2935_s18, 4  ;;  %p2864_p0 = scmp.ne.s32.totalorder %s3701_s2, %s2863_s22  ;;  %s23_s19 = int_to_ptr.vmem [resolvable:$true] %s22_s19 }
   0x4   :  { %p2867_p1 = scmp.lt.u32.totalorder %s2863_s22, %s3701_s2 }
   0x6   :  { %p2869_p2 = pnand %p2867_p1, %p2864_p0 }
   0x8   :  { %2872 = shalt.err (!%p2869_p2)
}
   0x9   :  { %s2873_s27 = scalar_lea.vmem %s23_s19, 4096  ;;  %p2878_p4 = scmp.lt.s32.totalorder %s23_s19, %s23_s19 }
   0xa   :  { %p2874_p3 = scmp.ne.s32.totalorder %s23_s19, %s2873_s27  ;;  %p2879_p5 = scmp.lt.s32.totalorder %s2873_s27, %s2873_s27 }
   0xc   :  { %p2880_p6 = por %p2879_p5, %p2878_p4 }
   0xe   :  { %p2881_p7 = pnand %p2880_p6, %p2874_p3 }
  0x10   :  { %2884 = shalt.err (!%p2881_p7)
}
  0x11   :  { %s2936_s28 = smov 256   ;;  %s2937_s29 = smov 16  }
  0x12   :  { %28 = dma.hbm_to_vmem [thread:$0]  %s3701_s2, 4096, %s23_s19, [#allocation7], %s2936_s28, %s2936_s28, %s2937_s29  }
  0x13   :  { %s2938_s7 = smov [#allocation9]   ;;  %s2885_s11 = scalar_lea.hbm %s3702_s3, 4096 }
  0x14   :  { %s34_s8 = sshll.u32 %s2938_s7, 4  ;;  %p2886_p8 = scmp.ne.s32.totalorder %s3702_s3, %s2885_s11  ;;  %s35_s8 = int_to_ptr.vmem [resolvable:$true] %s34_s8 }
  0x15   :  { %p2889_p9 = scmp.lt.u32.totalorder %s2885_s11, %s3702_s3 }
  0x17   :  { %p2891_p10 = pnand %p2889_p9, %p2886_p8 }
  0x19   :  { %2894 = shalt.err (!%p2891_p10)
}
  0x1a   :  { %s2895_s16 = scalar_lea.vmem %s35_s8, 4096  ;;  %p2900_p12 = scmp.lt.s32.totalorder %s35_s8, %s35_s8 }
  0x1b   :  { %p2896_p11 = scmp.ne.s32.totalorder %s35_s8, %s2895_s16  ;;  %p2901_p13 = scmp.lt.s32.totalorder %s2895_s16, %s2895_s16 }
  0x1d   :  { %p2902_p0 = por %p2901_p13, %p2900_p12 }
  0x1f   :  { %p2903_p1 = pnand %p2902_p0, %p2896_p11 }
  0x21   :  { %2906 = shalt.err (!%p2903_p1)
}
  0x22   :  { %40 = dma.hbm_to_vmem [thread:$0]  %s3702_s3, 4096, %s35_s8, [#allocation10], %s2936_s28, %s2936_s28, %s2937_s29  }
  0x23   :  { %2929 = dma.done.wait [#allocation7], 4096  }
  0x24   :  { %2930 = vsyncadd [#allocation7], 4294963200 }
  0x25   :  { %2931 = dma.done.wait [#allocation10], 4096  }
  0x26   :  { %2932 = vsyncadd [#allocation10], 4294963200  ;;  %v2939_v0 = vmov 0   ;;  %v2471_v1 = vld [vmem:[#allocation6 + $0x4] ss:$16 sps:$4 sm:$0xff]   ;;  %v2523_v43 = vld [vmem:[%s3699_s0 + $0x8] sm:$0xff]  }
  0x27   :  { %370 = vmatprep.mubr.bf16.mxu0 %v2939_v0  ;;  %483 = vmatprep.mubr.bf16.mxu1 %v2939_v0  ;;  %v2473_v2 = vld [vmem:[#allocation6 + $0xc] ss:$16 sps:$4 sm:$0xff]   ;;  %v2475_v3 = vld [vmem:[#allocation6] ss:$16 sps:$4 sm:$0xff]   ;;  %v2476_v4 = vld [vmem:[#allocation6 + $0x8] ss:$16 sps:$4 sm:$0xff]  }
  0x28   :  { %2469 = vset.pattern.permute.xlu0 %v2939_v0  ;;  %2470 = vset.pattern.permute.xlu1 %v2939_v0  ;;  %v2477_v5 = vld [vmem:[#allocation6 + $0x24] ss:$16 sps:$4 sm:$0xff]   ;;  %v2479_v6 = vld [vmem:[#allocation6 + $0x2c] ss:$16 sps:$4 sm:$0xff]   ;;  %v2481_v7 = vld [vmem:[#allocation6 + $0x20] ss:$16 sps:$4 sm:$0xff]  }
  0x29   :  { %338 = vmatprep.subr.bf16.mxu0 %v2471_v1  ;;  %451 = vmatprep.subr.bf16.mxu1 %v2473_v2  ;;  %v2482_v8 = vld [vmem:[#allocation6 + $0x28] ss:$16 sps:$4 sm:$0xff]   ;;  %v2483_v9 = vld [vmem:[#allocation6 + $0x44] ss:$16 sps:$4 sm:$0xff]   ;;  %v2485_v10 = vld [vmem:[#allocation6 + $0x4c] ss:$16 sps:$4 sm:$0xff]  }
  0x2a   :  { %339 = vmatpush1.bf16.msra.mxu0 %v2475_v3  ;;  %452 = vmatpush1.bf16.msra.mxu1 %v2476_v4  ;;  %v2487_v11 = vld [vmem:[#allocation6 + $0x40] ss:$16 sps:$4 sm:$0xff]   ;;  %v2488_v12 = vld [vmem:[#allocation6 + $0x48] ss:$16 sps:$4 sm:$0xff]   ;;  %v2489_v13 = vld [vmem:[#allocation6 + $0x64] ss:$16 sps:$4 sm:$0xff]  }
  0x2b   :  { %340 = vmatprep.subr.bf16.mxu0 %v2477_v5  ;;  %453 = vmatprep.subr.bf16.mxu1 %v2479_v6  ;;  %v2491_v14 = vld [vmem:[#allocation6 + $0x6c] ss:$16 sps:$4 sm:$0xff]   ;;  %v2493_v15 = vld [vmem:[#allocation6 + $0x60] ss:$16 sps:$4 sm:$0xff]   ;;  %v2494_v16 = vld [vmem:[#allocation6 + $0x68] ss:$16 sps:$4 sm:$0xff]  }
  0x2c   :  { %v2495_v17 = vld [vmem:[#allocation6 + $0x84] ss:$16 sps:$4 sm:$0xff]   ;;  %v2497_v18 = vld [vmem:[#allocation6 + $0x8c] ss:$16 sps:$4 sm:$0xff]   ;;  %v2499_v19 = vld [vmem:[#allocation6 + $0x80] ss:$16 sps:$4 sm:$0xff]  }
  0x2d   :  { %v2500_v20 = vld [vmem:[#allocation6 + $0x88] ss:$16 sps:$4 sm:$0xff]   ;;  %v2501_v21 = vld [vmem:[#allocation6 + $0xa4] ss:$16 sps:$4 sm:$0xff]   ;;  %v2503_v22 = vld [vmem:[#allocation6 + $0xac] ss:$16 sps:$4 sm:$0xff]  }
  0x2e   :  { %341 = vmatpush1.bf16.msra.mxu0 %v2481_v7  ;;  %454 = vmatpush1.bf16.msra.mxu1 %v2482_v8  ;;  %v2505_v23 = vld [vmem:[#allocation6 + $0xa0] ss:$16 sps:$4 sm:$0xff]   ;;  %v2506_v24 = vld [vmem:[#allocation6 + $0xa8] ss:$16 sps:$4 sm:$0xff]   ;;  %v2507_v25 = vld [vmem:[#allocation6 + $0xc4] ss:$16 sps:$4 sm:$0xff]  }
  0x2f   :  { %342 = vmatprep.subr.bf16.mxu0 %v2483_v9  ;;  %455 = vmatprep.subr.bf16.mxu1 %v2485_v10  ;;  %v2509_v26 = vld [vmem:[#allocation6 + $0xcc] ss:$16 sps:$4 sm:$0xff]   ;;  %v2511_v27 = vld [vmem:[#allocation6 + $0xc0] ss:$16 sps:$4 sm:$0xff]   ;;  %v2512_v28 = vld [vmem:[#allocation6 + $0xc8] ss:$16 sps:$4 sm:$0xff]  }
  0x30   :  { %v2513_v29 = vld [vmem:[#allocation6 + $0xe4] ss:$16 sps:$4 sm:$0xff]   ;;  %v2515_v30 = vld [vmem:[#allocation6 + $0xec] ss:$16 sps:$4 sm:$0xff]   ;;  %v2517_v31 = vld [vmem:[#allocation6 + $0xe0] ss:$16 sps:$4 sm:$0xff]  }
  0x31   :  { %v2518_v32 = vld [vmem:[#allocation6 + $0xe8] ss:$16 sps:$4 sm:$0xff]   ;;  %v3002_v33 = vld [vmem:[#allocation9 + $0x4] ss:$16 sps:$4 sm:$0xff]   ;;  %v3004_v34 = vld [vmem:[#allocation9 + $0xc] ss:$16 sps:$4 sm:$0xff]  }
  0x32   :  { %343 = vmatpush1.bf16.msra.mxu0 %v2487_v11  ;;  %456 = vmatpush1.bf16.msra.mxu1 %v2488_v12  ;;  %v2519_v35 = vld [vmem:[%s3699_s0] sm:$0xff]   ;;  %v3015_v38 = vld [vmem:[#allocation9 + $0x8] ss:$16 sps:$4 sm:$0xff]   ;;  %v3017_v39 = vld [vmem:[#allocation9 + $0x2c] ss:$16 sps:$4 sm:$0xff]   ;;  %v2940_v12 = vmov 0.0|0.0  }
  0x33   :  { %344 = vmatprep.subr.bf16.mxu0 %v2489_v13  ;;  %457 = vmatprep.subr.bf16.mxu1 %v2491_v14  ;;  %v3009_v36 = vld [vmem:[#allocation9] ss:$16 sps:$4 sm:$0xff]   ;;  %v3012_v37 = vld [vmem:[#allocation9 + $0x24] ss:$16 sps:$4 sm:$0xff]   ;;  %v3028_v42 = vld [vmem:[#allocation9 + $0x28] ss:$16 sps:$4 sm:$0xff]  }
  0x34   :  { %v3021_v40 = vld [vmem:[#allocation9 + $0x20] ss:$16 sps:$4 sm:$0xff]   ;;  %v3025_v41 = vld [vmem:[#allocation9 + $0x44] ss:$16 sps:$4 sm:$0xff]   ;;  %v3040_v46 = vld [vmem:[#allocation9 + $0x4c] ss:$16 sps:$4 sm:$0xff]  }
  0x35   :  { %v3035_v44 = vld [vmem:[#allocation9 + $0x40] ss:$16 sps:$4 sm:$0xff]   ;;  %v3037_v45 = vld [vmem:[#allocation9 + $0x64] ss:$16 sps:$4 sm:$0xff]   ;;  %v3043_v47 = vld [vmem:[#allocation9 + $0x48] ss:$16 sps:$4 sm:$0xff]  }
  0x36   :  { %345 = vmatpush1.bf16.msra.mxu0 %v2493_v15  ;;  %458 = vmatpush1.bf16.msra.mxu1 %v2494_v16  ;;  %v3045_v48 = vld [vmem:[#allocation9 + $0x6c] ss:$16 sps:$4 sm:$0xff]   ;;  %v3050_v49 = vld [vmem:[#allocation9 + $0x60] ss:$16 sps:$4 sm:$0xff]   ;;  %v3053_v50 = vld [vmem:[#allocation9 + $0x84] ss:$16 sps:$4 sm:$0xff]   ;;  %v110_v15 = vlaneseq }
  0x37   :  { %346 = vmatprep.subr.bf16.mxu0 %v2495_v17  ;;  %459 = vmatprep.subr.bf16.mxu1 %v2497_v18  ;;  %v3057_v51 = vld [vmem:[#allocation9 + $0x68] ss:$16 sps:$4 sm:$0xff]   ;;  %v2529_v52 = vld [vmem:[%s3699_s0 + $0x10] sm:$0xff]   ;;  %v3066_v54 = vld [vmem:[#allocation9 + $0x8c] ss:$16 sps:$4 sm:$0xff]  }
  0x38   :  { %v3063_v53 = vld [vmem:[#allocation9 + $0x80] ss:$16 sps:$4 sm:$0xff]   ;;  %v3069_v55 = vld [vmem:[#allocation9 + $0xa4] ss:$16 sps:$4 sm:$0xff]   ;;  %v3072_v56 = vld [vmem:[#allocation9 + $0x88] ss:$16 sps:$4 sm:$0xff]  }
  0x39   :  { %v3074_v57 = vld [vmem:[#allocation9 + $0xac] ss:$16 sps:$4 sm:$0xff]   ;;  %v977_v58 = vld [vmem:[%s3700_s1] sm:$0xff]  ;;  %v3089_v61 = vld [vmem:[#allocation9 + $0xa8] ss:$16 sps:$4 sm:$0xff]   ;;  %v111_v16 = vshrl.u32 %v110_v15, 7 }
  0x3a   :  { %347 = vmatpush1.bf16.msra.mxu0 %v2499_v19  ;;  %460 = vmatpush1.bf16.msra.mxu1 %v2500_v20  ;;  %v3082_v59 = vld [vmem:[#allocation9 + $0xa0] ss:$16 sps:$4 sm:$0xff]   ;;  %v3086_v60 = vld [vmem:[#allocation9 + $0xc4] ss:$16 sps:$4 sm:$0xff]   ;;  %v2536_v62 = vld [vmem:[%s3699_s0 + $0x18] sm:$0xff]  }
  0x3b   :  { %348 = vmatprep.subr.bf16.mxu0 %v2501_v21  ;;  %461 = vmatprep.subr.bf16.mxu1 %v2503_v22  ;;  %v3096_v63 = vld [vmem:[#allocation9 + $0xc0] ss:$16 sps:$4 sm:$0xff]   ;;  %v3098_v1 = vld [vmem:[#allocation9 + $0xcc] ss:$16 sps:$4 sm:$0xff]   ;;  %v3102_v2 = vld [vmem:[#allocation9 + $0xe4] ss:$16 sps:$4 sm:$0xff]  }
  0x3c   :  { %981 = vperm.xlu0 %2469, %v977_v58   ;;  %v3104_v3 = vld [vmem:[#allocation9 + $0xc8] ss:$16 sps:$4 sm:$0xff]   ;;  %v3106_v4 = vld [vmem:[#allocation9 + $0xec] ss:$16 sps:$4 sm:$0xff]   ;;  %v3115_v6 = vld [vmem:[#allocation9 + $0xe0] ss:$16 sps:$4 sm:$0xff]  }
  0x3d   :  { %v978_v5 = vld [vmem:[%s3700_s1 + $0x8] sm:$0xff]  ;;  %v2543_v8 = vld [vmem:[%s3699_s0 + $0x20] sm:$0xff]   ;;  %v2557_v10 = vld [vmem:[%s3699_s0 + $0x30] sm:$0xff]   ;;  %v112_v17 = vsub.s32 0, %v111_v16  ;;  %v116_v19 = vsub.s32 1, %v111_v16 }
  0x3e   :  { %349 = vmatpush1.bf16.msra.mxu0 %v2505_v23  ;;  %462 = vmatpush1.bf16.msra.mxu1 %v2506_v24  ;;  %v3119_v7 = vld [vmem:[#allocation9 + $0xe8] ss:$16 sps:$4 sm:$0xff]   ;;  %v2282_v13 = vld [vmem:[%s3700_s1 + $0x10] sm:$0xff]  ;;  %v108_v18 = vld [vmem:[%s3703_s4] sm:$0xf]  ;;  %v120_v23 = vsub.s32 2, %v111_v16 }
  0x3f   :  { %350 = vmatprep.subr.bf16.mxu0 %v2507_v25  ;;  %463 = vmatprep.subr.bf16.mxu1 %v2509_v26  ;;  %v2550_v9 = vld [vmem:[%s3699_s0 + $0x28] sm:$0xff]   ;;  %v2565_v11 = vld [vmem:[%s3699_s0 + $0x38] sm:$0xff]   ;;  %v3189_v20 = vrot.slane %v108_v18, %v112_v17  ;;  %v3191_v21 = vrot.slane %v108_v18, %v116_v19 }
  0x40   :  { %986 = vperm.xlu0 %2469, %v978_v5   ;;  %1149 = vperm.xlu1 %2470, %v2282_v13   ;;  %v2283_v14 = vld [vmem:[%s3700_s1 + $0x18] sm:$0xff]  ;;  %v3196_v58 = vrot.slane %v108_v18, %v120_v23 }
  0x42   :  { %351 = vmatpush1.bf16.msra.mxu0 %v2511_v27  ;;  %464 = vmatpush1.bf16.msra.mxu1 %v2512_v28 }
  0x43   :  { %352 = vmatprep.subr.bf16.mxu0 %v2513_v29  ;;  %465 = vmatprep.subr.bf16.mxu1 %v2515_v30 }
  0x44   :  { %1154 = vperm.xlu1 %2470, %v2283_v14  }
  0x46   :  { %353 = vmatpush1.bf16.msra.mxu0 %v2517_v31  ;;  %466 = vmatpush1.bf16.msra.mxu1 %v2518_v32  ;;  %v124_v32 = vsub.s32 3, %v111_v16 }
  0x47   :  { %835 = vmatprep.subr.bf16.mxu0 %v3002_v33  ;;  %878 = vmatprep.subr.bf16.mxu1 %v3004_v34 }
  0x49   :  { %371 = vmatmul.mubr.bf16.vlgmr.msra.gmra.mrb[0].mxu0 %v2519_v35  ;;  %484 = vmatmul.mubr.bf16.vlgmr.msra.gmra.mrb[0].mxu1 %v2519_v35 }
  0x4a   :  { %836 = vmatpush1.bf16.msra.mxu0 %v3009_v36  ;;  %380 = vmatprep.mubr.bf16.mxu0 %v2939_v0 }
  0x4b   :  { %493 = vmatprep.mubr.bf16.mxu1 %v2939_v0  ;;  %837 = vmatprep.subr.bf16.mxu0 %v3012_v37 }
  0x4c   :  { %879 = vmatpush1.bf16.msra.mxu1 %v3015_v38 }
  0x4d   :  { %880 = vmatprep.subr.bf16.mxu1 %v3017_v39 }
  0x4e   :  { %838 = vmatpush1.bf16.msra.mxu0 %v3021_v40 }
  0x4f   :  { %839 = vmatprep.subr.bf16.mxu0 %v3025_v41 }
  0x50   :  { %881 = vmatpush1.bf16.msra.mxu1 %v3028_v42 }
  0x51   :  { %381 = vmatmul.mubr.bf16.gmra.mrb[4].mxu0 %v2523_v43  ;;  %494 = vmatmul.mubr.bf16.gmra.mrb[4].mxu1 %v2523_v43 }
  0x52   :  { %390 = vmatprep.mubr.bf16.mxu0 %v2939_v0  ;;  %503 = vmatprep.mubr.bf16.mxu1 %v2939_v0 }
  0x53   :  { %840 = vmatpush1.bf16.msra.mxu0 %v3035_v44  ;;  %882 = vmatprep.subr.bf16.mxu1 %v3040_v46 }
  0x54   :  { %841 = vmatprep.subr.bf16.mxu0 %v3037_v45  ;;  %883 = vmatpush1.bf16.msra.mxu1 %v3043_v47 }
  0x55   :  { %884 = vmatprep.subr.bf16.mxu1 %v3045_v48 }
  0x57   :  { %842 = vmatpush1.bf16.msra.mxu0 %v3050_v49 }
  0x58   :  { %843 = vmatprep.subr.bf16.mxu0 %v3053_v50  ;;  %885 = vmatpush1.bf16.msra.mxu1 %v3057_v51 }
  0x59   :  { %391 = vmatmul.mubr.bf16.gmra.mrb[8].mxu0 %v2529_v52  ;;  %504 = vmatmul.mubr.bf16.gmra.mrb[8].mxu1 %v2529_v52 }
  0x5a   :  { %400 = vmatprep.mubr.bf16.mxu0 %v2939_v0  ;;  %513 = vmatprep.mubr.bf16.mxu1 %v2939_v0 }
  0x5b   :  { %844 = vmatpush1.bf16.msra.mxu0 %v3063_v53  ;;  %886 = vmatprep.subr.bf16.mxu1 %v3066_v54 }
  0x5c   :  { %845 = vmatprep.subr.bf16.mxu0 %v3069_v55  ;;  %887 = vmatpush1.bf16.msra.mxu1 %v3072_v56 }
  0x5d   :  { %888 = vmatprep.subr.bf16.mxu1 %v3074_v57 }
  0x5f   :  { %846 = vmatpush1.bf16.msra.mxu0 %v3082_v59 }
  0x60   :  { %847 = vmatprep.subr.bf16.mxu0 %v3086_v60  ;;  %889 = vmatpush1.bf16.msra.mxu1 %v3089_v61 }
  0x61   :  { %401 = vmatmul.mubr.bf16.gmra.mrb[12].mxu0 %v2536_v62  ;;  %514 = vmatmul.mubr.bf16.gmra.mrb[12].mxu1 %v2536_v62 }
  0x62   :  { %410 = vmatprep.mubr.bf16.mxu0 %v2939_v0  ;;  %523 = vmatprep.mubr.bf16.mxu1 %v2939_v0 }
  0x63   :  { %848 = vmatpush1.bf16.msra.mxu0 %v3096_v63  ;;  %890 = vmatprep.subr.bf16.mxu1 %v3098_v1 }
  0x64   :  { %849 = vmatprep.subr.bf16.mxu0 %v3102_v2  ;;  %891 = vmatpush1.bf16.msra.mxu1 %v3104_v3 }
  0x65   :  { %892 = vmatprep.subr.bf16.mxu1 %v3106_v4 }
  0x67   :  { %850 = vmatpush1.bf16.msra.mxu0 %v3115_v6 }
  0x68   :  { %893 = vmatpush1.bf16.msra.mxu1 %v3119_v7  ;;  %1002 = vmatprep.subr.bf16.mxu0 %v3002_v33 }
  0x69   :  { %411 = vmatmul.mubr.bf16.gmra.mrb[16].mxu0 %v2543_v8  ;;  %524 = vmatmul.mubr.bf16.gmra.mrb[16].mxu1 %v2543_v8 }
  0x6a   :  { %420 = vmatprep.mubr.bf16.mxu0 %v2939_v0  ;;  %533 = vmatprep.mubr.bf16.mxu1 %v2939_v0 }
  0x6b   :  { %1045 = vmatprep.subr.bf16.mxu1 %v3004_v34 }
  0x71   :  { %421 = vmatmul.mubr.bf16.gmra.mrb[20].mxu0 %v2550_v9  ;;  %534 = vmatmul.mubr.bf16.gmra.mrb[20].mxu1 %v2550_v9 }
  0x72   :  { %430 = vmatprep.mubr.bf16.mxu0 %v2939_v0  ;;  %543 = vmatprep.mubr.bf16.mxu1 %v2939_v0 }
  0x79   :  { %431 = vmatmul.mubr.bf16.gmra.mrb[24].mxu0 %v2557_v10  ;;  %544 = vmatmul.mubr.bf16.gmra.mrb[24].mxu1 %v2557_v10  ;;  %v3199_v10 = vrot.slane %v108_v18, %v124_v32 }
  0x7a   :  { %440 = vmatprep.mubr.bf16.mxu0 %v2939_v0  ;;  %553 = vmatprep.mubr.bf16.mxu1 %v2939_v0 }
  0x81   :  { %441 = vmatmul.mubr.bf16.gmra.mrb[28].mxu0 %v2565_v11  ;;  %554 = vmatmul.mubr.bf16.gmra.mrb[28].mxu1 %v2565_v11 }
  0x82   :  { %867 = vmatprep.mubr.bf16.mxu0 %v2939_v0  ;;  %910 = vmatprep.mubr.bf16.mxu1 %v2939_v0 }
  0x89   :  { %868 = vmatmul.mubr.bf16.vlgmr.msra.gmra.mrb[0].mxu0 %v2940_v12  ;;  %911 = vmatmul.mubr.bf16.vlgmr.msra.gmra.mrb[0].mxu1 %v2940_v12 }
  0x8a   :  { %1003 = vmatpush1.bf16.msra.mxu0 %v3009_v36  ;;  %1046 = vmatpush1.bf16.msra.mxu1 %v3015_v38 }
  0x8b   :  { %1004 = vmatprep.subr.bf16.mxu0 %v3012_v37  ;;  %1047 = vmatprep.subr.bf16.mxu1 %v3017_v39 }
  0x8c   :  { %1034 = vmatprep.mubr.bf16.mxu0 %v2939_v0  ;;  %1077 = vmatprep.mubr.bf16.mxu1 %v2939_v0 }
  0x8e   :  { %1005 = vmatpush1.bf16.msra.mxu0 %v3021_v40  ;;  %1048 = vmatpush1.bf16.msra.mxu1 %v3028_v42 }
  0x8f   :  { %1006 = vmatprep.subr.bf16.mxu0 %v3025_v41  ;;  %1049 = vmatprep.subr.bf16.mxu1 %v3040_v46 }
  0x92   :  { %1007 = vmatpush1.bf16.msra.mxu0 %v3035_v44  ;;  %1050 = vmatpush1.bf16.msra.mxu1 %v3043_v47 }
  0x93   :  { %1008 = vmatprep.subr.bf16.mxu0 %v3037_v45  ;;  %1051 = vmatprep.subr.bf16.mxu1 %v3045_v48 }
  0x96   :  { %1009 = vmatpush1.bf16.msra.mxu0 %v3050_v49  ;;  %1052 = vmatpush1.bf16.msra.mxu1 %v3057_v51 }
  0x97   :  { %1010 = vmatprep.subr.bf16.mxu0 %v3053_v50  ;;  %1053 = vmatprep.subr.bf16.mxu1 %v3066_v54 }
  0x9a   :  { %1011 = vmatpush1.bf16.msra.mxu0 %v3063_v53  ;;  %1054 = vmatpush1.bf16.msra.mxu1 %v3072_v56 }
  0x9b   :  { %1012 = vmatprep.subr.bf16.mxu0 %v3069_v55  ;;  %1055 = vmatprep.subr.bf16.mxu1 %v3074_v57 }
  0x9e   :  { %1013 = vmatpush1.bf16.msra.mxu0 %v3082_v59  ;;  %1056 = vmatpush1.bf16.msra.mxu1 %v3089_v61 }
  0x9f   :  { %1014 = vmatprep.subr.bf16.mxu0 %v3086_v60  ;;  %1057 = vmatprep.subr.bf16.mxu1 %v3098_v1 }
  0xa2   :  { %1015 = vmatpush1.bf16.msra.mxu0 %v3096_v63  ;;  %1058 = vmatpush1.bf16.msra.mxu1 %v3104_v3 }
  0xa3   :  { %1016 = vmatprep.subr.bf16.mxu0 %v3102_v2  ;;  %1059 = vmatprep.subr.bf16.mxu1 %v3106_v4 }
  0xa6   :  { %1017 = vmatpush1.bf16.msra.mxu0 %v3115_v6  ;;  %1060 = vmatpush1.bf16.msra.mxu1 %v3119_v7 }
  0xa7   :  { %1170 = vmatprep.subr.bf16.mxu0 %v3002_v33  ;;  %1213 = vmatprep.subr.bf16.mxu1 %v3004_v34 }
 0x15c   :  { %v869_v22 = vpop.f32.mrb[0].mxu0  ;;  %v912_v24 = vpop.f32.mrb[0].mxu1 }
 0x15d   :  { %v2332_v25 = vadd.f32 %v869_v22, %v3189_v20  ;;  %v871_v26 = vpop.f32.mrb[1].mxu0  ;;  %v914_v27 = vpop.f32.mrb[1].mxu1  ;;  %v2364_v11 = vadd.f32 %v912_v24, %v3196_v58 }
 0x15e   :  { %v2333_v28 = vadd.f32 %v871_v26, %v3191_v21  ;;  %v873_v29 = vpop.f32.mrb[2].mxu0  ;;  %v916_v30 = vpop.f32.mrb[2].mxu1  ;;  %v2365_v13 = vadd.f32 %v914_v27, %v3199_v10 }
 0x15f   :  { %v2270_v31 = vmul.f32 -1.442695, %v2332_v25  ;;  %v2334_v35 = vadd.f32 %v873_v29, %v3189_v20  ;;  %v875_v43 = vpop.f32.mrb[3].mxu0  ;;  %v918_v52 = vpop.f32.mrb[3].mxu1  ;;  %v2366_v12 = vadd.f32 %v916_v30, %v3196_v58  ;;  %v2272_v14 = vmul.f32 -1.442695, %v2364_v11 }
 0x160   :  { %v2271_v62 = vmul.f32 -1.442695, %v2333_v28  ;;  %v2335_v5 = vadd.f32 %v875_v43, %v3191_v21  ;;  %v2367_v17 = vadd.f32 %v918_v52, %v3199_v10 }
 0x161   :  { %2575 = vpow2.f32 %v2270_v31  ;;  %v2273_v8 = vmul.f32 -1.442695, %v2334_v35  ;;  %v2275_v15 = vmul.f32 -1.442695, %v2366_v12 }
 0x162   :  { %v2274_v9 = vmul.f32 -1.442695, %v2335_v5  ;;  %2577 = vpow2.f32 %v2271_v62 }
 0x163   :  { %2579 = vpow2.f32 %v2273_v8 }
 0x164   :  { %2581 = vpow2.f32 %v2274_v9 }
 0x165   :  { %2583 = vtanh.f32 %v2365_v13 }
 0x166   :  { %2585 = vpow2.f32 %v2272_v14 }
 0x167   :  { %2587 = vpow2.f32 %v2275_v15 }
 0x16b   :  { %v2576_v16 = vpop.eup %2575 }
 0x16c   :  { %v947_v19 = vadd.f32 1.0, %v2576_v16  ;;  %v2578_v22 = vpop.eup %2577 }
 0x16d   :  { %v2580_v18 = vpop.eup %2579  ;;  %v948_v23 = vadd.f32 1.0, %v2578_v22 }
 0x16e   :  { %2589 = vrcp.f32 %v947_v19  ;;  %v950_v24 = vadd.f32 1.0, %v2580_v18  ;;  %v2582_v25 = vpop.eup %2581 }
 0x16f   :  { %2591 = vtanh.f32 %v2367_v17  ;;  %v951_v26 = vadd.f32 1.0, %v2582_v25  ;;  %v2584_v27 = vpop.eup %2583 }
 0x170   :  { %2593 = vrcp.f32 %v948_v23  ;;  %v2586_v28 = vpop.eup %2585  ;;  %v2290_v23 = vld [vmem:[%s3700_s1 + $0x20] sm:$0xff] }
 0x171   :  { %2595 = vrcp.f32 %v950_v24  ;;  %v2588_v29 = vpop.eup %2587  ;;  %v949_v52 = vadd.f32 1.0, %v2586_v28  ;;  %v2291_v24 = vld [vmem:[%s3700_s1 + $0x28] sm:$0xff]  ;;  %1317 = vperm.xlu0 %2469, %v2290_v23  }
 0x172   :  { %2597 = vrcp.f32 %v951_v26  ;;  %v952_v11 = vadd.f32 1.0, %v2588_v29  ;;  %1322 = vperm.xlu1 %2470, %v2291_v24  }
 0x173   :  { %2599 = vrcp.f32 %v949_v52 }
 0x178   :  { %v2590_v30 = vpop.eup %2589 }
 0x179   :  { %v2592_v31 = vpop.eup %2591  ;;  %v969_v32 = vmul.f32 %v2590_v30, %v2584_v27 }
 0x17a   :  { %v2594_v35 = vpop.eup %2593 }
 0x17b   :  { %v2596_v43 = vpop.eup %2595  ;;  %v967_v62 = vmul.f32 0.0, %v2594_v35 }
 0x17c   :  { %v970_v5 = vmul.f32 %v2596_v43, %v2592_v31  ;;  %v2598_v8 = vpop.eup %2597 }
 0x17d   :  { %v3205_v9 = vadd.f32 %v969_v32, %v967_v62  ;;  %v968_v12 = vmul.f32 0.0, %v2598_v8  ;;  %v2600_v14 = vpop.eup %2599 }
 0x17f   :  { %v3207_v13 = vadd.f32 %v970_v5, %v968_v12  ;;  %2601 = vtanh.f32 %v3205_v9 }
 0x180   :  { %2603 = vrcp.f32 %v952_v11 }
 0x181   :  { %2605 = vtanh.f32 %v3207_v13 }
 0x189   :  { %v2602_v15 = vpop.eup %2601 }
 0x18a   :  { %v2604_v16 = vpop.eup %2603  ;;  %v3211_v19 = vmul.f32 %v2602_v15, %v2600_v14 }
 0x18b   :  { %v2606_v17 = vpop.eup %2605 }
 0x18c   :  { %v3213_v22 = vmul.f32 %v2606_v17, %v2604_v16 }
 0x18e   :  { %v1001_v18 = vpack.c.bf16 %v3213_v22, %v3211_v19 }
 0x190   :  { %1035 = vmatmul.mubr.bf16.vlgmr.msra.gmra.mrb[4].mxu0 %v1001_v18  ;;  %1078 = vmatmul.mubr.bf16.vlgmr.msra.gmra.mrb[4].mxu1 %v1001_v18 }
 0x191   :  { %1171 = vmatpush1.bf16.msra.mxu0 %v3009_v36  ;;  %1214 = vmatpush1.bf16.msra.mxu1 %v3015_v38 }
 0x192   :  { %1172 = vmatprep.subr.bf16.mxu0 %v3012_v37  ;;  %1215 = vmatprep.subr.bf16.mxu1 %v3017_v39 }
 0x193   :  { %1202 = vmatprep.mubr.bf16.mxu0 %v2939_v0  ;;  %1245 = vmatprep.mubr.bf16.mxu1 %v2939_v0 }
 0x195   :  { %1173 = vmatpush1.bf16.msra.mxu0 %v3021_v40  ;;  %1216 = vmatpush1.bf16.msra.mxu1 %v3028_v42 }
 0x196   :  { %1174 = vmatprep.subr.bf16.mxu0 %v3025_v41  ;;  %1217 = vmatprep.subr.bf16.mxu1 %v3040_v46 }
 0x199   :  { %1175 = vmatpush1.bf16.msra.mxu0 %v3035_v44  ;;  %1218 = vmatpush1.bf16.msra.mxu1 %v3043_v47 }
 0x19a   :  { %1176 = vmatprep.subr.bf16.mxu0 %v3037_v45  ;;  %1219 = vmatprep.subr.bf16.mxu1 %v3045_v48 }
 0x19d   :  { %1177 = vmatpush1.bf16.msra.mxu0 %v3050_v49  ;;  %1220 = vmatpush1.bf16.msra.mxu1 %v3057_v51 }
 0x19e   :  { %1178 = vmatprep.subr.bf16.mxu0 %v3053_v50  ;;  %1221 = vmatprep.subr.bf16.mxu1 %v3066_v54 }
 0x1a1   :  { %1179 = vmatpush1.bf16.msra.mxu0 %v3063_v53  ;;  %1222 = vmatpush1.bf16.msra.mxu1 %v3072_v56 }
 0x1a2   :  { %1180 = vmatprep.subr.bf16.mxu0 %v3069_v55  ;;  %1223 = vmatprep.subr.bf16.mxu1 %v3074_v57 }
 0x1a5   :  { %1181 = vmatpush1.bf16.msra.mxu0 %v3082_v59  ;;  %1224 = vmatpush1.bf16.msra.mxu1 %v3089_v61 }
 0x1a6   :  { %1182 = vmatprep.subr.bf16.mxu0 %v3086_v60  ;;  %1225 = vmatprep.subr.bf16.mxu1 %v3098_v1 }
 0x1a9   :  { %1183 = vmatpush1.bf16.msra.mxu0 %v3096_v63  ;;  %1226 = vmatpush1.bf16.msra.mxu1 %v3104_v3 }
 0x1aa   :  { %1184 = vmatprep.subr.bf16.mxu0 %v3102_v2  ;;  %1227 = vmatprep.subr.bf16.mxu1 %v3106_v4 }
 0x1ad   :  { %1185 = vmatpush1.bf16.msra.mxu0 %v3115_v6  ;;  %1228 = vmatpush1.bf16.msra.mxu1 %v3119_v7 }
 0x1ae   :  { %1338 = vmatprep.subr.bf16.mxu0 %v3002_v33  ;;  %1381 = vmatprep.subr.bf16.mxu1 %v3004_v34 }
 0x263   :  { %v1036_v25 = vpop.f32.mrb[4].mxu0  ;;  %v1079_v26 = vpop.f32.mrb[4].mxu1 }
 0x264   :  { %v2336_v27 = vadd.f32 %v1036_v25, %v3189_v20  ;;  %v1038_v28 = vpop.f32.mrb[5].mxu0  ;;  %v1081_v29 = vpop.f32.mrb[5].mxu1  ;;  %v2368_v14 = vadd.f32 %v1079_v26, %v3196_v58 }
 0x265   :  { %v2337_v30 = vadd.f32 %v1038_v28, %v3191_v21  ;;  %v1040_v31 = vpop.f32.mrb[6].mxu0  ;;  %v1083_v32 = vpop.f32.mrb[6].mxu1  ;;  %v2369_v16 = vadd.f32 %v1081_v29, %v3199_v10 }
 0x266   :  { %v2276_v35 = vmul.f32 -1.442695, %v2336_v27  ;;  %v2338_v43 = vadd.f32 %v1040_v31, %v3189_v20  ;;  %v1042_v52 = vpop.f32.mrb[7].mxu0  ;;  %v1085_v62 = vpop.f32.mrb[7].mxu1  ;;  %v2370_v15 = vadd.f32 %v1083_v32, %v3196_v58  ;;  %v2278_v17 = vmul.f32 -1.442695, %v2368_v14 }
 0x267   :  { %v2277_v5 = vmul.f32 -1.442695, %v2337_v30  ;;  %v2339_v8 = vadd.f32 %v1042_v52, %v3191_v21  ;;  %v2371_v24 = vadd.f32 %v1085_v62, %v3199_v10 }
 0x268   :  { %2607 = vpow2.f32 %v2276_v35  ;;  %v2279_v11 = vmul.f32 -1.442695, %v2338_v43  ;;  %v2281_v18 = vmul.f32 -1.442695, %v2370_v15 }
 0x269   :  { %v2280_v12 = vmul.f32 -1.442695, %v2339_v8  ;;  %2609 = vpow2.f32 %v2277_v5 }
 0x26a   :  { %2611 = vpow2.f32 %v2279_v11 }
 0x26b   :  { %2613 = vpow2.f32 %v2280_v12 }
 0x26c   :  { %2615 = vtanh.f32 %v2369_v16 }
 0x26d   :  { %2617 = vpow2.f32 %v2278_v17 }
 0x26e   :  { %2619 = vpow2.f32 %v2281_v18 }
 0x272   :  { %v2608_v23 = vpop.eup %2607 }
 0x273   :  { %v1114_v25 = vadd.f32 1.0, %v2608_v23  ;;  %v2610_v27 = vpop.eup %2609 }
 0x274   :  { %v2612_v28 = vpop.eup %2611  ;;  %v1115_v30 = vadd.f32 1.0, %v2610_v27  ;;  %v1150_v27 = vpop.permute.xlu1 %1149 }
 0x275   :  { %2621 = vrcp.f32 %v1114_v25  ;;  %v1117_v26 = vadd.f32 1.0, %v2612_v28  ;;  %v2614_v31 = vpop.eup %2613  ;;  %v982_v25 = vpop.permute.xlu0 %981 }
 0x276   :  { %2623 = vtanh.f32 %v2371_v24  ;;  %v1118_v32 = vadd.f32 1.0, %v2614_v31  ;;  %v2616_v29 = vpop.eup %2615 }
 0x277   :  { %2625 = vrcp.f32 %v1115_v30  ;;  %v2618_v35 = vpop.eup %2617 }
 0x278   :  { %2627 = vrcp.f32 %v1117_v26  ;;  %v2620_v43 = vpop.eup %2619  ;;  %v1116_v11 = vadd.f32 1.0, %v2618_v35 }
 0x279   :  { %2629 = vrcp.f32 %v1118_v32  ;;  %v1119_v18 = vadd.f32 1.0, %v2620_v43  ;;  %v3274_v32 = vadd.f32 %v982_v25, %v3211_v19  ;;  %v2298_v19 = vld [vmem:[%s3700_s1 + $0x30] sm:$0xff] }
 0x27a   :  { %2631 = vrcp.f32 %v1116_v11  ;;  %1485 = vperm.xlu0 %2469, %v2298_v19  }
 0x27f   :  { %v2622_v52 = vpop.eup %2621 }
 0x280   :  { %v2624_v5 = vpop.eup %2623  ;;  %v1136_v62 = vmul.f32 %v2622_v52, %v2616_v29  ;;  %v987_v29 = vpop.permute.xlu0 %986 }
 0x281   :  { %v2626_v8 = vpop.eup %2625 }
 0x282   :  { %v2628_v12 = vpop.eup %2627  ;;  %v1134_v14 = vmul.f32 %v2626_v8, %v3205_v9 }
 0x283   :  { %v1137_v15 = vmul.f32 %v2628_v12, %v2624_v5  ;;  %v2630_v16 = vpop.eup %2629  ;;  %v3281_v5 = vadd.f32 %v987_v29, %v3213_v22  ;;  %v2299_v22 = vld [vmem:[%s3700_s1 + $0x38] sm:$0xff] }
 0x284   :  { %v3266_v17 = vadd.f32 %v1136_v62, %v1134_v14  ;;  %v1135_v23 = vmul.f32 %v2630_v16, %v3207_v13  ;;  %v2632_v28 = vpop.eup %2631  ;;  %v1155_v13 = vpop.permute.xlu1 %1154  ;;  %1490 = vperm.xlu1 %2470, %v2299_v22  }
 0x286   :  { %2633 = vtanh.f32 %v3266_v17  ;;  %v3270_v24 = vadd.f32 %v1137_v15, %v1135_v23 }
 0x287   :  { %2635 = vrcp.f32 %v1119_v18 }
 0x288   :  { %2637 = vtanh.f32 %v3270_v24 }
 0x290   :  { %v2634_v30 = vpop.eup %2633 }
 0x291   :  { %v1142_v9 = vmul.f32 %v2634_v30, %v2632_v28  ;;  %v2636_v26 = vpop.eup %2635 }
 0x292   :  { %v2638_v31 = vpop.eup %2637 }
 0x293   :  { %v3276_v35 = vadd.f32 %v1150_v27, %v1142_v9  ;;  %v1143_v43 = vmul.f32 %v2638_v31, %v2636_v26 }
 0x295   :  { %v1159_v52 = vmax.f32 %v3274_v32, %v3276_v35  ;;  %v3283_v62 = vadd.f32 %v1155_v13, %v1143_v43  ;;  %v1169_v8 = vpack.c.bf16 %v1143_v43, %v1142_v9 }
 0x297   :  { %v1160_v11 = vmax.f32 %v3281_v5, %v3283_v62  ;;  %1203 = vmatmul.mubr.bf16.vlgmr.msra.gmra.mrb[8].mxu0 %v1169_v8  ;;  %1246 = vmatmul.mubr.bf16.vlgmr.msra.gmra.mrb[8].mxu1 %v1169_v8 }
 0x298   :  { %1339 = vmatpush1.bf16.msra.mxu0 %v3009_v36  ;;  %1382 = vmatpush1.bf16.msra.mxu1 %v3015_v38 }
 0x299   :  { %1340 = vmatprep.subr.bf16.mxu0 %v3012_v37  ;;  %1383 = vmatprep.subr.bf16.mxu1 %v3017_v39 }
 0x29a   :  { %1370 = vmatprep.mubr.bf16.mxu0 %v2939_v0  ;;  %1413 = vmatprep.mubr.bf16.mxu1 %v2939_v0 }
 0x29c   :  { %1341 = vmatpush1.bf16.msra.mxu0 %v3021_v40  ;;  %1384 = vmatpush1.bf16.msra.mxu1 %v3028_v42 }
 0x29d   :  { %1342 = vmatprep.subr.bf16.mxu0 %v3025_v41  ;;  %1385 = vmatprep.subr.bf16.mxu1 %v3040_v46 }
 0x2a0   :  { %1343 = vmatpush1.bf16.msra.mxu0 %v3035_v44  ;;  %1386 = vmatpush1.bf16.msra.mxu1 %v3043_v47 }
 0x2a1   :  { %1344 = vmatprep.subr.bf16.mxu0 %v3037_v45  ;;  %1387 = vmatprep.subr.bf16.mxu1 %v3045_v48 }
 0x2a4   :  { %1345 = vmatpush1.bf16.msra.mxu0 %v3050_v49  ;;  %1388 = vmatpush1.bf16.msra.mxu1 %v3057_v51 }
 0x2a5   :  { %1346 = vmatprep.subr.bf16.mxu0 %v3053_v50  ;;  %1389 = vmatprep.subr.bf16.mxu1 %v3066_v54 }
 0x2a8   :  { %1347 = vmatpush1.bf16.msra.mxu0 %v3063_v53  ;;  %1390 = vmatpush1.bf16.msra.mxu1 %v3072_v56 }
 0x2a9   :  { %1348 = vmatprep.subr.bf16.mxu0 %v3069_v55  ;;  %1391 = vmatprep.subr.bf16.mxu1 %v3074_v57 }
 0x2ac   :  { %1349 = vmatpush1.bf16.msra.mxu0 %v3082_v59  ;;  %1392 = vmatpush1.bf16.msra.mxu1 %v3089_v61 }
 0x2ad   :  { %1350 = vmatprep.subr.bf16.mxu0 %v3086_v60  ;;  %1393 = vmatprep.subr.bf16.mxu1 %v3098_v1 }
 0x2b0   :  { %1351 = vmatpush1.bf16.msra.mxu0 %v3096_v63  ;;  %1394 = vmatpush1.bf16.msra.mxu1 %v3104_v3 }
 0x2b1   :  { %1352 = vmatprep.subr.bf16.mxu0 %v3102_v2  ;;  %1395 = vmatprep.subr.bf16.mxu1 %v3106_v4 }
 0x2b4   :  { %1353 = vmatpush1.bf16.msra.mxu0 %v3115_v6  ;;  %1396 = vmatpush1.bf16.msra.mxu1 %v3119_v7 }
 0x2b5   :  { %1506 = vmatprep.subr.bf16.mxu0 %v3002_v33  ;;  %1549 = vmatprep.subr.bf16.mxu1 %v3004_v34 }
 0x36a   :  { %v1204_v12 = vpop.f32.mrb[8].mxu0  ;;  %v1247_v14 = vpop.f32.mrb[8].mxu1 }
 0x36b   :  { %v2340_v15 = vadd.f32 %v1204_v12, %v3189_v20  ;;  %v1206_v16 = vpop.f32.mrb[9].mxu0  ;;  %v1249_v18 = vpop.f32.mrb[9].mxu1  ;;  %v2372_v13 = vadd.f32 %v1247_v14, %v3196_v58 }
 0x36c   :  { %v2341_v33 = vadd.f32 %v1206_v16, %v3191_v21  ;;  %v1208_v23 = vpop.f32.mrb[10].mxu0  ;;  %v1251_v34 = vpop.f32.mrb[10].mxu1  ;;  %v2373_v8 = vadd.f32 %v1249_v18, %v3199_v10 }
 0x36d   :  { %v2284_v25 = vmul.f32 -1.442695, %v2340_v15  ;;  %v2342_v27 = vadd.f32 %v1208_v23, %v3189_v20  ;;  %v1210_v28 = vpop.f32.mrb[11].mxu0  ;;  %v1253_v30 = vpop.f32.mrb[11].mxu1  ;;  %v2374_v43 = vadd.f32 %v1251_v34, %v3196_v58  ;;  %v2286_v19 = vmul.f32 -1.442695, %v2372_v13 }
 0x36e   :  { %v2285_v9 = vmul.f32 -1.442695, %v2341_v33  ;;  %v2343_v26 = vadd.f32 %v1210_v28, %v3191_v21  ;;  %v2375_v15 = vadd.f32 %v1253_v30, %v3199_v10 }
 0x36f   :  { %2639 = vpow2.f32 %v2284_v25  ;;  %v2287_v31 = vmul.f32 -1.442695, %v2342_v27  ;;  %v2289_v22 = vmul.f32 -1.442695, %v2374_v43 }
 0x370   :  { %v2288_v29 = vmul.f32 -1.442695, %v2343_v26  ;;  %2641 = vpow2.f32 %v2285_v9 }
 0x371   :  { %2643 = vpow2.f32 %v2287_v31 }
 0x372   :  { %2645 = vpow2.f32 %v2288_v29 }
 0x373   :  { %2647 = vtanh.f32 %v2373_v8 }
 0x374   :  { %2649 = vpow2.f32 %v2286_v19 }
 0x375   :  { %2651 = vpow2.f32 %v2289_v22 }
 0x379   :  { %v2640_v12 = vpop.eup %2639 }
 0x37a   :  { %v1282_v16 = vadd.f32 1.0, %v2640_v12  ;;  %v2642_v33 = vpop.eup %2641 }
 0x37b   :  { %v2644_v23 = vpop.eup %2643  ;;  %v1283_v25 = vadd.f32 1.0, %v2642_v33 }
 0x37c   :  { %2653 = vrcp.f32 %v1282_v16  ;;  %v1285_v14 = vadd.f32 1.0, %v2644_v23  ;;  %v2646_v27 = vpop.eup %2645 }
 0x37d   :  { %2655 = vtanh.f32 %v2375_v15  ;;  %v1286_v34 = vadd.f32 1.0, %v2646_v27  ;;  %v2648_v18 = vpop.eup %2647 }
 0x37e   :  { %2657 = vrcp.f32 %v1283_v25  ;;  %v2650_v28 = vpop.eup %2649 }
 0x37f   :  { %2659 = vrcp.f32 %v1285_v14  ;;  %v2652_v9 = vpop.eup %2651  ;;  %v1284_v13 = vadd.f32 1.0, %v2650_v28  ;;  %v1318_v14 = vpop.permute.xlu0 %1317 }
 0x380   :  { %2661 = vrcp.f32 %v1286_v34  ;;  %v1287_v15 = vadd.f32 1.0, %v2652_v9  ;;  %v1323_v28 = vpop.permute.xlu1 %1322 }
 0x381   :  { %2663 = vrcp.f32 %v1284_v13 }
 0x386   :  { %v2654_v26 = vpop.eup %2653 }
 0x387   :  { %v2656_v31 = vpop.eup %2655  ;;  %v1304_v30 = vmul.f32 %v2654_v26, %v2648_v18 }
 0x388   :  { %v2658_v29 = vpop.eup %2657 }
 0x389   :  { %v2660_v43 = vpop.eup %2659  ;;  %v1302_v8 = vmul.f32 %v2658_v29, %v3266_v17 }
 0x38a   :  { %v1305_v19 = vmul.f32 %v2660_v43, %v2656_v31  ;;  %v2662_v22 = vpop.eup %2661 }
 0x38b   :  { %v3336_v12 = vadd.f32 %v1304_v30, %v1302_v8  ;;  %v1303_v16 = vmul.f32 %v2662_v22, %v3270_v24  ;;  %v2664_v23 = vpop.eup %2663 }
 0x38d   :  { %2665 = vtanh.f32 %v3336_v12  ;;  %v3340_v33 = vadd.f32 %v1305_v19, %v1303_v16 }
 0x38e   :  { %2667 = vrcp.f32 %v1287_v15 }
 0x38f   :  { %2669 = vtanh.f32 %v3340_v33 }
 0x397   :  { %v2666_v25 = vpop.eup %2665 }
 0x398   :  { %v1310_v27 = vmul.f32 %v2666_v25, %v2664_v23  ;;  %v2668_v17 = vpop.eup %2667 }
 0x399   :  { %v2670_v34 = vpop.eup %2669 }
 0x39a   :  { %v1325_v18 = vadd.f32 %v1318_v14, %v1310_v27  ;;  %v1311_v26 = vmul.f32 %v2670_v34, %v2668_v17 }
 0x39c   :  { %v3346_v24 = vmax.f32 %v1159_v52, %v1325_v18  ;;  %v1326_v9 = vadd.f32 %v1323_v28, %v1311_v26  ;;  %v1337_v31 = vpack.c.bf16 %v1311_v26, %v1310_v27  ;;  %v1486_v26 = vpop.permute.xlu0 %1485 }
 0x39e   :  { %v3351_v30 = vmax.f32 %v1160_v11, %v1326_v9  ;;  %1371 = vmatmul.mubr.bf16.vlgmr.msra.gmra.mrb[12].mxu0 %v1337_v31  ;;  %1414 = vmatmul.mubr.bf16.vlgmr.msra.gmra.mrb[12].mxu1 %v1337_v31 }
 0x39f   :  { %1507 = vmatpush1.bf16.msra.mxu0 %v3009_v36  ;;  %1550 = vmatpush1.bf16.msra.mxu1 %v3015_v38  ;;  %v3385_v36 = vld [vmem:[#allocation9 + $0x4] ss:$16 sps:$4 sm:$0xff]  }
 0x3a0   :  { %1508 = vmatprep.subr.bf16.mxu0 %v3012_v37  ;;  %1551 = vmatprep.subr.bf16.mxu1 %v3017_v39  ;;  %v3388_v37 = vld [vmem:[#allocation9 + $0xc] ss:$16 sps:$4 sm:$0xff]   ;;  %v2306_v38 = vld [vmem:[%s3700_s1 + $0x40] sm:$0xff] }
 0x3a1   :  { %1538 = vmatprep.mubr.bf16.mxu0 %v2939_v0  ;;  %1581 = vmatprep.mubr.bf16.mxu1 %v2939_v0  ;;  %v2307_v39 = vld [vmem:[%s3700_s1 + $0x48] sm:$0xff] }
 0x3a2   :  { %1653 = vperm.xlu0 %2469, %v2306_v38   ;;  %1658 = vperm.xlu1 %2470, %v2307_v39   ;;  %v1491_v39 = vpop.permute.xlu1 %1490 }
 0x3a3   :  { %1509 = vmatpush1.bf16.msra.mxu0 %v3021_v40  ;;  %1552 = vmatpush1.bf16.msra.mxu1 %v3028_v42 }
 0x3a4   :  { %1510 = vmatprep.subr.bf16.mxu0 %v3025_v41  ;;  %1553 = vmatprep.subr.bf16.mxu1 %v3040_v46 }
 0x3a7   :  { %1511 = vmatpush1.bf16.msra.mxu0 %v3035_v44  ;;  %1554 = vmatpush1.bf16.msra.mxu1 %v3043_v47 }
 0x3a8   :  { %1512 = vmatprep.subr.bf16.mxu0 %v3037_v45  ;;  %1555 = vmatprep.subr.bf16.mxu1 %v3045_v48 }
 0x3ab   :  { %1513 = vmatpush1.bf16.msra.mxu0 %v3050_v49  ;;  %1556 = vmatpush1.bf16.msra.mxu1 %v3057_v51 }
 0x3ac   :  { %1514 = vmatprep.subr.bf16.mxu0 %v3053_v50  ;;  %1557 = vmatprep.subr.bf16.mxu1 %v3066_v54 }
 0x3af   :  { %1515 = vmatpush1.bf16.msra.mxu0 %v3063_v53  ;;  %1558 = vmatpush1.bf16.msra.mxu1 %v3072_v56 }
 0x3b0   :  { %1516 = vmatprep.subr.bf16.mxu0 %v3069_v55  ;;  %1559 = vmatprep.subr.bf16.mxu1 %v3074_v57 }
 0x3b3   :  { %1517 = vmatpush1.bf16.msra.mxu0 %v3082_v59  ;;  %1560 = vmatpush1.bf16.msra.mxu1 %v3089_v61 }
 0x3b4   :  { %1518 = vmatprep.subr.bf16.mxu0 %v3086_v60  ;;  %1561 = vmatprep.subr.bf16.mxu1 %v3098_v1 }
 0x3b7   :  { %1519 = vmatpush1.bf16.msra.mxu0 %v3096_v63  ;;  %1562 = vmatpush1.bf16.msra.mxu1 %v3104_v3 }
 0x3b8   :  { %1520 = vmatprep.subr.bf16.mxu0 %v3102_v2  ;;  %1563 = vmatprep.subr.bf16.mxu1 %v3106_v4 }
 0x3bb   :  { %1521 = vmatpush1.bf16.msra.mxu0 %v3115_v6  ;;  %1564 = vmatpush1.bf16.msra.mxu1 %v3119_v7 }
 0x3bc   :  { %1674 = vmatprep.subr.bf16.mxu0 %v3385_v36  ;;  %1717 = vmatprep.subr.bf16.mxu1 %v3388_v37 }
 0x471   :  { %v1372_v40 = vpop.f32.mrb[12].mxu0  ;;  %v1415_v41 = vpop.f32.mrb[12].mxu1 }
 0x472   :  { %v2344_v42 = vadd.f32 %v1372_v40, %v3189_v20  ;;  %v1374_v44 = vpop.f32.mrb[13].mxu0  ;;  %v1417_v45 = vpop.f32.mrb[13].mxu1  ;;  %v2376_v59 = vadd.f32 %v1415_v41, %v3196_v58 }
 0x473   :  { %v2345_v46 = vadd.f32 %v1374_v44, %v3191_v21  ;;  %v1376_v47 = vpop.f32.mrb[14].mxu0  ;;  %v1419_v48 = vpop.f32.mrb[14].mxu1  ;;  %v2377_v61 = vadd.f32 %v1417_v45, %v3199_v10  ;;  %v3421_v45 = vld [vmem:[#allocation9] ss:$16 sps:$4 sm:$0xff]  }
 0x474   :  { %v2292_v49 = vmul.f32 -1.442695, %v2344_v42  ;;  %v2346_v50 = vadd.f32 %v1376_v47, %v3189_v20  ;;  %v1378_v51 = vpop.f32.mrb[15].mxu0  ;;  %v1421_v53 = vpop.f32.mrb[15].mxu1  ;;  %v2378_v60 = vadd.f32 %v1419_v48, %v3196_v58  ;;  %v2294_v63 = vmul.f32 -1.442695, %v2376_v59 }
 0x475   :  { %v2293_v54 = vmul.f32 -1.442695, %v2345_v46  ;;  %v2347_v55 = vadd.f32 %v1378_v51, %v3191_v21  ;;  %v2379_v3 = vadd.f32 %v1421_v53, %v3199_v10  ;;  %v3424_v46 = vld [vmem:[#allocation9 + $0x8] ss:$16 sps:$4 sm:$0xff]   ;;  %v3427_v47 = vld [vmem:[#allocation9 + $0x24] ss:$16 sps:$4 sm:$0xff]  }
 0x476   :  { %2671 = vpow2.f32 %v2292_v49  ;;  %v2295_v56 = vmul.f32 -1.442695, %v2346_v50  ;;  %v2297_v1 = vmul.f32 -1.442695, %v2378_v60  ;;  %v3430_v48 = vld [vmem:[#allocation9 + $0x2c] ss:$16 sps:$4 sm:$0xff]  }
 0x477   :  { %v2296_v57 = vmul.f32 -1.442695, %v2347_v55  ;;  %2673 = vpow2.f32 %v2293_v54  ;;  %v3435_v49 = vld [vmem:[#allocation9 + $0x20] ss:$16 sps:$4 sm:$0xff]   ;;  %v3438_v50 = vld [vmem:[#allocation9 + $0x28] ss:$16 sps:$4 sm:$0xff]  }
 0x478   :  { %2675 = vpow2.f32 %v2295_v56  ;;  %v3441_v51 = vld [vmem:[#allocation9 + $0x44] ss:$16 sps:$4 sm:$0xff]   ;;  %v3444_v53 = vld [vmem:[#allocation9 + $0x4c] ss:$16 sps:$4 sm:$0xff]   ;;  %v3447_v54 = vld [vmem:[#allocation9 + $0x40] ss:$16 sps:$4 sm:$0xff]  }
 0x479   :  { %2677 = vpow2.f32 %v2296_v57  ;;  %v3450_v55 = vld [vmem:[#allocation9 + $0x48] ss:$16 sps:$4 sm:$0xff]   ;;  %v3453_v56 = vld [vmem:[#allocation9 + $0x64] ss:$16 sps:$4 sm:$0xff]   ;;  %v3456_v57 = vld [vmem:[#allocation9 + $0x6c] ss:$16 sps:$4 sm:$0xff]  }
 0x47a   :  { %2679 = vtanh.f32 %v2377_v61  ;;  %v3459_v59 = vld [vmem:[#allocation9 + $0x60] ss:$16 sps:$4 sm:$0xff]   ;;  %v3462_v60 = vld [vmem:[#allocation9 + $0x68] ss:$16 sps:$4 sm:$0xff]   ;;  %v3465_v61 = vld [vmem:[#allocation9 + $0x84] ss:$16 sps:$4 sm:$0xff]  }
 0x47b   :  { %2681 = vpow2.f32 %v2294_v63  ;;  %v3468_v63 = vld [vmem:[#allocation9 + $0x8c] ss:$16 sps:$4 sm:$0xff]  }
 0x47c   :  { %2683 = vpow2.f32 %v2297_v1  ;;  %v3471_v1 = vld [vmem:[#allocation9 + $0x80] ss:$16 sps:$4 sm:$0xff]  }
 0x480   :  { %v2672_v2 = vpop.eup %2671 }
 0x481   :  { %v1450_v4 = vadd.f32 1.0, %v2672_v2  ;;  %v2674_v6 = vpop.eup %2673  ;;  %v3474_v2 = vld [vmem:[#allocation9 + $0x88] ss:$16 sps:$4 sm:$0xff]  }
 0x482   :  { %v2676_v7 = vpop.eup %2675  ;;  %v1451_v32 = vadd.f32 1.0, %v2674_v6  ;;  %v3483_v6 = vld [vmem:[#allocation9 + $0xa0] ss:$16 sps:$4 sm:$0xff]  }
 0x483   :  { %2685 = vrcp.f32 %v1450_v4  ;;  %v1453_v35 = vadd.f32 1.0, %v2676_v7  ;;  %v2678_v52 = vpop.eup %2677  ;;  %v3480_v4 = vld [vmem:[#allocation9 + $0xac] ss:$16 sps:$4 sm:$0xff]   ;;  %v3486_v7 = vld [vmem:[#allocation9 + $0xa8] ss:$16 sps:$4 sm:$0xff]  }
 0x484   :  { %2687 = vtanh.f32 %v2379_v3  ;;  %v1454_v5 = vadd.f32 1.0, %v2678_v52  ;;  %v2680_v62 = vpop.eup %2679  ;;  %v3477_v3 = vld [vmem:[#allocation9 + $0xa4] ss:$16 sps:$4 sm:$0xff]   ;;  %v3495_v52 = vld [vmem:[#allocation9 + $0xc0] ss:$16 sps:$4 sm:$0xff]  }
 0x485   :  { %2689 = vrcp.f32 %v1451_v32  ;;  %v2682_v11 = vpop.eup %2681  ;;  %v3489_v32 = vld [vmem:[#allocation9 + $0xc4] ss:$16 sps:$4 sm:$0xff]  }
 0x486   :  { %2691 = vrcp.f32 %v1453_v35  ;;  %v2684_v29 = vpop.eup %2683  ;;  %v1452_v22 = vadd.f32 1.0, %v2682_v11  ;;  %v3492_v35 = vld [vmem:[#allocation9 + $0xcc] ss:$16 sps:$4 sm:$0xff]  }
 0x487   :  { %2693 = vrcp.f32 %v1454_v5  ;;  %v1455_v27 = vadd.f32 1.0, %v2684_v29  ;;  %v3498_v5 = vld [vmem:[#allocation9 + $0xc8] ss:$16 sps:$4 sm:$0xff]   ;;  %v3504_v11 = vld [vmem:[#allocation9 + $0xec] ss:$16 sps:$4 sm:$0xff]  }
 0x488   :  { %2695 = vrcp.f32 %v1452_v22  ;;  %v3507_v29 = vld [vmem:[#allocation9 + $0xe0] ss:$16 sps:$4 sm:$0xff]  }
 0x48d   :  { %v2686_v13 = vpop.eup %2685 }
 0x48e   :  { %v2688_v43 = vpop.eup %2687  ;;  %v1472_v8 = vmul.f32 %v2686_v13, %v2680_v62  ;;  %v3501_v62 = vld [vmem:[#allocation9 + $0xe4] ss:$16 sps:$4 sm:$0xff]   ;;  %v3510_v13 = vld [vmem:[#allocation9 + $0xe8] ss:$16 sps:$4 sm:$0xff]  }
 0x48f   :  { %v2690_v19 = vpop.eup %2689 }
 0x490   :  { %v2692_v15 = vpop.eup %2691  ;;  %v1470_v16 = vmul.f32 %v2690_v19, %v3336_v12 }
 0x491   :  { %v1473_v23 = vmul.f32 %v2692_v15, %v2688_v43  ;;  %v2694_v25 = vpop.eup %2693  ;;  %v2314_v43 = vld [vmem:[%s3700_s1 + $0x50] sm:$0xff] }
 0x492   :  { %v3406_v14 = vadd.f32 %v1472_v8, %v1470_v16  ;;  %v1471_v17 = vmul.f32 %v2694_v25, %v3340_v33  ;;  %v2696_v18 = vpop.eup %2695  ;;  %v2315_v8 = vld [vmem:[%s3700_s1 + $0x58] sm:$0xff]  ;;  %1821 = vperm.xlu0 %2469, %v2314_v43  }
 0x493   :  { %1826 = vperm.xlu1 %2470, %v2315_v8  }
 0x494   :  { %2697 = vtanh.f32 %v3406_v14  ;;  %v3410_v34 = vadd.f32 %v1473_v23, %v1471_v17 }
 0x495   :  { %2699 = vrcp.f32 %v1455_v27 }
 0x496   :  { %2701 = vtanh.f32 %v3410_v34 }
 0x49e   :  { %v2698_v28 = vpop.eup %2697 }
 0x49f   :  { %v1478_v9 = vmul.f32 %v2698_v28, %v2696_v18  ;;  %v2700_v12 = vpop.eup %2699 }
 0x4a0   :  { %v2702_v31 = vpop.eup %2701 }
 0x4a1   :  { %v3413_v38 = vadd.f32 %v1486_v26, %v1478_v9  ;;  %v1479_v40 = vmul.f32 %v2702_v31, %v2700_v12 }
 0x4a3   :  { %v1495_v33 = vmax.f32 %v3346_v24, %v3413_v38  ;;  %v3417_v41 = vadd.f32 %v1491_v39, %v1479_v40  ;;  %v1505_v42 = vpack.c.bf16 %v1479_v40, %v1478_v9  ;;  %v2322_v24 = vld [vmem:[%s3700_s1 + $0x60] sm:$0xff] }
 0x4a4   :  { %1989 = vperm.xlu0 %2469, %v2322_v24  }
 0x4a5   :  { %v1496_v44 = vmax.f32 %v3351_v30, %v3417_v41  ;;  %1539 = vmatmul.mubr.bf16.vlgmr.msra.gmra.mrb[16].mxu0 %v1505_v42  ;;  %1582 = vmatmul.mubr.bf16.vlgmr.msra.gmra.mrb[16].mxu1 %v1505_v42  ;;  %v2323_v30 = vld [vmem:[%s3700_s1 + $0x68] sm:$0xff] }
 0x4a6   :  { %1675 = vmatpush1.bf16.msra.mxu0 %v3421_v45  ;;  %1718 = vmatpush1.bf16.msra.mxu1 %v3424_v46 }
 0x4a7   :  { %1676 = vmatprep.subr.bf16.mxu0 %v3427_v47  ;;  %1719 = vmatprep.subr.bf16.mxu1 %v3430_v48 }
 0x4a8   :  { %1706 = vmatprep.mubr.bf16.mxu0 %v2939_v0  ;;  %1749 = vmatprep.mubr.bf16.mxu1 %v2939_v0 }
 0x4a9   :  { %1994 = vperm.xlu1 %2470, %v2323_v30  }
 0x4aa   :  { %1677 = vmatpush1.bf16.msra.mxu0 %v3435_v49  ;;  %1720 = vmatpush1.bf16.msra.mxu1 %v3438_v50 }
 0x4ab   :  { %1678 = vmatprep.subr.bf16.mxu0 %v3441_v51  ;;  %1721 = vmatprep.subr.bf16.mxu1 %v3444_v53 }
 0x4ae   :  { %1679 = vmatpush1.bf16.msra.mxu0 %v3447_v54  ;;  %1722 = vmatpush1.bf16.msra.mxu1 %v3450_v55 }
 0x4af   :  { %1680 = vmatprep.subr.bf16.mxu0 %v3453_v56  ;;  %1723 = vmatprep.subr.bf16.mxu1 %v3456_v57 }
 0x4b2   :  { %1681 = vmatpush1.bf16.msra.mxu0 %v3459_v59  ;;  %1724 = vmatpush1.bf16.msra.mxu1 %v3462_v60 }
 0x4b3   :  { %1682 = vmatprep.subr.bf16.mxu0 %v3465_v61  ;;  %1725 = vmatprep.subr.bf16.mxu1 %v3468_v63 }
 0x4b6   :  { %1683 = vmatpush1.bf16.msra.mxu0 %v3471_v1  ;;  %1726 = vmatpush1.bf16.msra.mxu1 %v3474_v2 }
 0x4b7   :  { %1684 = vmatprep.subr.bf16.mxu0 %v3477_v3  ;;  %1727 = vmatprep.subr.bf16.mxu1 %v3480_v4 }
 0x4ba   :  { %1685 = vmatpush1.bf16.msra.mxu0 %v3483_v6  ;;  %1728 = vmatpush1.bf16.msra.mxu1 %v3486_v7 }
 0x4bb   :  { %1686 = vmatprep.subr.bf16.mxu0 %v3489_v32  ;;  %1729 = vmatprep.subr.bf16.mxu1 %v3492_v35 }
 0x4be   :  { %1687 = vmatpush1.bf16.msra.mxu0 %v3495_v52  ;;  %1730 = vmatpush1.bf16.msra.mxu1 %v3498_v5 }
 0x4bf   :  { %1688 = vmatprep.subr.bf16.mxu0 %v3501_v62  ;;  %1731 = vmatprep.subr.bf16.mxu1 %v3504_v11 }
 0x4c2   :  { %1689 = vmatpush1.bf16.msra.mxu0 %v3507_v29  ;;  %1732 = vmatpush1.bf16.msra.mxu1 %v3510_v13 }
 0x4c3   :  { %1842 = vmatprep.subr.bf16.mxu0 %v3385_v36  ;;  %1885 = vmatprep.subr.bf16.mxu1 %v3388_v37 }
 0x578   :  { %v1540_v19 = vpop.f32.mrb[16].mxu0  ;;  %v1583_v22 = vpop.f32.mrb[16].mxu1 }
 0x579   :  { %v2348_v15 = vadd.f32 %v1540_v19, %v3189_v20  ;;  %v1542_v16 = vpop.f32.mrb[17].mxu0  ;;  %v1585_v23 = vpop.f32.mrb[17].mxu1  ;;  %v2380_v42 = vadd.f32 %v1583_v22, %v3196_v58 }
 0x57a   :  { %v2349_v25 = vadd.f32 %v1542_v16, %v3191_v21  ;;  %v1544_v27 = vpop.f32.mrb[18].mxu0  ;;  %v1587_v17 = vpop.f32.mrb[18].mxu1  ;;  %v2381_v8 = vadd.f32 %v1585_v23, %v3199_v10 }
 0x57b   :  { %v2300_v18 = vmul.f32 -1.442695, %v2348_v15  ;;  %v2350_v28 = vadd.f32 %v1544_v27, %v3189_v20  ;;  %v1546_v26 = vpop.f32.mrb[19].mxu0  ;;  %v1589_v9 = vpop.f32.mrb[19].mxu1  ;;  %v2382_v43 = vadd.f32 %v1587_v17, %v3196_v58  ;;  %v2302_v19 = vmul.f32 -1.442695, %v2380_v42 }
 0x57c   :  { %v2301_v12 = vmul.f32 -1.442695, %v2349_v25  ;;  %v2351_v31 = vadd.f32 %v1546_v26, %v3191_v21  ;;  %v2383_v25 = vadd.f32 %v1589_v9, %v3199_v10 }
 0x57d   :  { %2703 = vpow2.f32 %v2300_v18  ;;  %v2303_v39 = vmul.f32 -1.442695, %v2350_v28  ;;  %v2305_v15 = vmul.f32 -1.442695, %v2382_v43 }
 0x57e   :  { %v2304_v40 = vmul.f32 -1.442695, %v2351_v31  ;;  %2705 = vpow2.f32 %v2301_v12 }
 0x57f   :  { %2707 = vpow2.f32 %v2303_v39 }
 0x580   :  { %2709 = vpow2.f32 %v2304_v40 }
 0x581   :  { %2711 = vtanh.f32 %v2381_v8 }
 0x582   :  { %2713 = vpow2.f32 %v2302_v19 }
 0x583   :  { %2715 = vpow2.f32 %v2305_v15 }
 0x587   :  { %v2704_v16 = vpop.eup %2703 }
 0x588   :  { %v1618_v27 = vadd.f32 1.0, %v2704_v16  ;;  %v2706_v18 = vpop.eup %2705 }
 0x589   :  { %v2708_v28 = vpop.eup %2707  ;;  %v1619_v26 = vadd.f32 1.0, %v2706_v18 }
 0x58a   :  { %2717 = vrcp.f32 %v1618_v27  ;;  %v1621_v22 = vadd.f32 1.0, %v2708_v28  ;;  %v2710_v12 = vpop.eup %2709 }
 0x58b   :  { %2719 = vtanh.f32 %v2383_v25  ;;  %v1622_v17 = vadd.f32 1.0, %v2710_v12  ;;  %v2712_v23 = vpop.eup %2711 }
 0x58c   :  { %2721 = vrcp.f32 %v1619_v26  ;;  %v2714_v31 = vpop.eup %2713 }
 0x58d   :  { %2723 = vrcp.f32 %v1621_v22  ;;  %v2716_v39 = vpop.eup %2715  ;;  %v1620_v8 = vadd.f32 1.0, %v2714_v31 }
 0x58e   :  { %2725 = vrcp.f32 %v1622_v17  ;;  %v1623_v25 = vadd.f32 1.0, %v2716_v39  ;;  %v1654_v17 = vpop.permute.xlu0 %1653 }
 0x58f   :  { %2727 = vrcp.f32 %v1620_v8 }
 0x594   :  { %v2718_v40 = vpop.eup %2717 }
 0x595   :  { %v2720_v42 = vpop.eup %2719  ;;  %v1640_v9 = vmul.f32 %v2718_v40, %v2712_v23 }
 0x596   :  { %v2722_v43 = vpop.eup %2721 }
 0x597   :  { %v2724_v19 = vpop.eup %2723  ;;  %v1638_v15 = vmul.f32 %v2722_v43, %v3406_v14 }
 0x598   :  { %v1641_v16 = vmul.f32 %v2724_v19, %v2720_v42  ;;  %v2726_v27 = vpop.eup %2725  ;;  %v1659_v42 = vpop.permute.xlu1 %1658 }
 0x599   :  { %v3530_v18 = vadd.f32 %v1640_v9, %v1638_v15  ;;  %v1639_v28 = vmul.f32 %v2726_v27, %v3410_v34  ;;  %v2728_v22 = vpop.eup %2727 }
 0x59b   :  { %2729 = vtanh.f32 %v3530_v18  ;;  %v3534_v26 = vadd.f32 %v1641_v16, %v1639_v28 }
 0x59c   :  { %2731 = vrcp.f32 %v1623_v25 }
 0x59d   :  { %2733 = vtanh.f32 %v3534_v26 }
 0x5a5   :  { %v2730_v12 = vpop.eup %2729 }
 0x5a6   :  { %v1646_v23 = vmul.f32 %v2730_v12, %v2728_v22  ;;  %v2732_v14 = vpop.eup %2731 }
 0x5a7   :  { %v2734_v31 = vpop.eup %2733 }
 0x5a8   :  { %v1661_v40 = vadd.f32 %v1654_v17, %v1646_v23  ;;  %v1647_v9 = vmul.f32 %v2734_v31, %v2732_v14 }
 0x5aa   :  { %v3540_v34 = vmax.f32 %v1495_v33, %v1661_v40  ;;  %v1662_v39 = vadd.f32 %v1659_v42, %v1647_v9  ;;  %v1673_v43 = vpack.c.bf16 %v1647_v9, %v1646_v23 }
 0x5ac   :  { %v3545_v8 = vmax.f32 %v1496_v44, %v1662_v39  ;;  %1707 = vmatmul.mubr.bf16.vlgmr.msra.gmra.mrb[20].mxu0 %v1673_v43  ;;  %1750 = vmatmul.mubr.bf16.vlgmr.msra.gmra.mrb[20].mxu1 %v1673_v43 }
 0x5ad   :  { %1843 = vmatpush1.bf16.msra.mxu0 %v3421_v45  ;;  %1886 = vmatpush1.bf16.msra.mxu1 %v3424_v46 }
 0x5ae   :  { %1844 = vmatprep.subr.bf16.mxu0 %v3427_v47  ;;  %1887 = vmatprep.subr.bf16.mxu1 %v3430_v48 }
 0x5af   :  { %1874 = vmatprep.mubr.bf16.mxu0 %v2939_v0  ;;  %1917 = vmatprep.mubr.bf16.mxu1 %v2939_v0 }
 0x5b1   :  { %1845 = vmatpush1.bf16.msra.mxu0 %v3435_v49  ;;  %1888 = vmatpush1.bf16.msra.mxu1 %v3438_v50 }
 0x5b2   :  { %1846 = vmatprep.subr.bf16.mxu0 %v3441_v51  ;;  %1889 = vmatprep.subr.bf16.mxu1 %v3444_v53 }
 0x5b5   :  { %1847 = vmatpush1.bf16.msra.mxu0 %v3447_v54  ;;  %1890 = vmatpush1.bf16.msra.mxu1 %v3450_v55 }
 0x5b6   :  { %1848 = vmatprep.subr.bf16.mxu0 %v3453_v56  ;;  %1891 = vmatprep.subr.bf16.mxu1 %v3456_v57 }
 0x5b9   :  { %1849 = vmatpush1.bf16.msra.mxu0 %v3459_v59  ;;  %1892 = vmatpush1.bf16.msra.mxu1 %v3462_v60 }
 0x5ba   :  { %1850 = vmatprep.subr.bf16.mxu0 %v3465_v61  ;;  %1893 = vmatprep.subr.bf16.mxu1 %v3468_v63 }
 0x5bd   :  { %1851 = vmatpush1.bf16.msra.mxu0 %v3471_v1  ;;  %1894 = vmatpush1.bf16.msra.mxu1 %v3474_v2 }
 0x5be   :  { %1852 = vmatprep.subr.bf16.mxu0 %v3477_v3  ;;  %1895 = vmatprep.subr.bf16.mxu1 %v3480_v4 }
 0x5c1   :  { %1853 = vmatpush1.bf16.msra.mxu0 %v3483_v6  ;;  %1896 = vmatpush1.bf16.msra.mxu1 %v3486_v7 }
 0x5c2   :  { %1854 = vmatprep.subr.bf16.mxu0 %v3489_v32  ;;  %1897 = vmatprep.subr.bf16.mxu1 %v3492_v35 }
 0x5c5   :  { %1855 = vmatpush1.bf16.msra.mxu0 %v3495_v52  ;;  %1898 = vmatpush1.bf16.msra.mxu1 %v3498_v5 }
 0x5c6   :  { %1856 = vmatprep.subr.bf16.mxu0 %v3501_v62  ;;  %1899 = vmatprep.subr.bf16.mxu1 %v3504_v11 }
 0x5c9   :  { %1857 = vmatpush1.bf16.msra.mxu0 %v3507_v29  ;;  %1900 = vmatpush1.bf16.msra.mxu1 %v3510_v13 }
 0x5ca   :  { %2010 = vmatprep.subr.bf16.mxu0 %v3385_v36  ;;  %2053 = vmatprep.subr.bf16.mxu1 %v3388_v37 }
 0x67f   :  { %v1708_v38 = vpop.f32.mrb[20].mxu0  ;;  %v1751_v33 = vpop.f32.mrb[20].mxu1 }
 0x680   :  { %v2352_v41 = vadd.f32 %v1708_v38, %v3189_v20  ;;  %v1710_v44 = vpop.f32.mrb[21].mxu0  ;;  %v1753_v19 = vpop.f32.mrb[21].mxu1  ;;  %v2384_v14 = vadd.f32 %v1751_v33, %v3196_v58 }
 0x681   :  { %v2353_v36 = vadd.f32 %v1710_v44, %v3191_v21  ;;  %v1712_v15 = vpop.f32.mrb[22].mxu0  ;;  %v1755_v37 = vpop.f32.mrb[22].mxu1  ;;  %v2385_v40 = vadd.f32 %v1753_v19, %v3199_v10 }
 0x682   :  { %v2308_v16 = vmul.f32 -1.442695, %v2352_v41  ;;  %v2354_v27 = vadd.f32 %v1712_v15, %v3189_v20  ;;  %v1714_v25 = vpop.f32.mrb[23].mxu0  ;;  %v1757_v28 = vpop.f32.mrb[23].mxu1  ;;  %v2386_v31 = vadd.f32 %v1755_v37, %v3196_v58  ;;  %v2310_v42 = vmul.f32 -1.442695, %v2384_v14 }
 0x683   :  { %v2309_v22 = vmul.f32 -1.442695, %v2353_v36  ;;  %v2355_v12 = vadd.f32 %v1714_v25, %v3191_v21  ;;  %v2387_v43 = vadd.f32 %v1757_v28, %v3199_v10 }
 0x684   :  { %2735 = vpow2.f32 %v2308_v16  ;;  %v2311_v17 = vmul.f32 -1.442695, %v2354_v27  ;;  %v2313_v9 = vmul.f32 -1.442695, %v2386_v31 }
 0x685   :  { %v2312_v23 = vmul.f32 -1.442695, %v2355_v12  ;;  %2737 = vpow2.f32 %v2309_v22 }
 0x686   :  { %2739 = vpow2.f32 %v2311_v17 }
 0x687   :  { %2741 = vpow2.f32 %v2312_v23 }
 0x688   :  { %2743 = vtanh.f32 %v2385_v40 }
 0x689   :  { %2745 = vpow2.f32 %v2310_v42 }
 0x68a   :  { %2747 = vpow2.f32 %v2313_v9 }
 0x68e   :  { %v2736_v39 = vpop.eup %2735 }
 0x68f   :  { %v1786_v24 = vadd.f32 1.0, %v2736_v39  ;;  %v2738_v30 = vpop.eup %2737 }
 0x690   :  { %v2740_v38 = vpop.eup %2739  ;;  %v1787_v41 = vadd.f32 1.0, %v2738_v30 }
 0x691   :  { %2749 = vrcp.f32 %v1786_v24  ;;  %v1789_v33 = vadd.f32 1.0, %v2740_v38  ;;  %v2742_v44 = vpop.eup %2741  ;;  %v1822_v24 = vpop.permute.xlu0 %1821 }
 0x692   :  { %2751 = vtanh.f32 %v2387_v43  ;;  %v1790_v36 = vadd.f32 1.0, %v2742_v44  ;;  %v2744_v19 = vpop.eup %2743 }
 0x693   :  { %2753 = vrcp.f32 %v1787_v41  ;;  %v2746_v15 = vpop.eup %2745 }
 0x694   :  { %2755 = vrcp.f32 %v1789_v33  ;;  %v2748_v37 = vpop.eup %2747  ;;  %v1788_v22 = vadd.f32 1.0, %v2746_v15  ;;  %v1827_v33 = vpop.permute.xlu1 %1826 }
 0x695   :  { %2757 = vrcp.f32 %v1790_v36  ;;  %v1791_v40 = vadd.f32 1.0, %v2748_v37 }
 0x696   :  { %2759 = vrcp.f32 %v1788_v22 }
 0x69b   :  { %v2750_v16 = vpop.eup %2749 }
 0x69c   :  { %v2752_v27 = vpop.eup %2751  ;;  %v1808_v25 = vmul.f32 %v2750_v16, %v2744_v19 }
 0x69d   :  { %v2754_v28 = vpop.eup %2753 }
 0x69e   :  { %v2756_v12 = vpop.eup %2755  ;;  %v1806_v17 = vmul.f32 %v2754_v28, %v3530_v18 }
 0x69f   :  { %v1809_v23 = vmul.f32 %v2756_v12, %v2752_v27  ;;  %v2758_v14 = vpop.eup %2757 }
 0x6a0   :  { %v3596_v31 = vadd.f32 %v1808_v25, %v1806_v17  ;;  %v1807_v42 = vmul.f32 %v2758_v14, %v3534_v26  ;;  %v2760_v39 = vpop.eup %2759 }
 0x6a2   :  { %2761 = vtanh.f32 %v3596_v31  ;;  %v3600_v9 = vadd.f32 %v1809_v23, %v1807_v42 }
 0x6a3   :  { %2763 = vrcp.f32 %v1791_v40 }
 0x6a4   :  { %2765 = vtanh.f32 %v3600_v9 }
 0x6ac   :  { %v2762_v43 = vpop.eup %2761 }
 0x6ad   :  { %v1814_v30 = vmul.f32 %v2762_v43, %v2760_v39  ;;  %v2764_v18 = vpop.eup %2763 }
 0x6ae   :  { %v2766_v38 = vpop.eup %2765 }
 0x6af   :  { %v3603_v41 = vadd.f32 %v1822_v24, %v1814_v30  ;;  %v1815_v44 = vmul.f32 %v2766_v38, %v2764_v18 }
 0x6b1   :  { %v1831_v26 = vmax.f32 %v3540_v34, %v3603_v41  ;;  %v3607_v36 = vadd.f32 %v1827_v33, %v1815_v44  ;;  %v1841_v19 = vpack.c.bf16 %v1815_v44, %v1814_v30  ;;  %v1990_v44 = vpop.permute.xlu0 %1989 }
 0x6b3   :  { %v1832_v15 = vmax.f32 %v3545_v8, %v3607_v36  ;;  %1875 = vmatmul.mubr.bf16.vlgmr.msra.gmra.mrb[24].mxu0 %v1841_v19  ;;  %1918 = vmatmul.mubr.bf16.vlgmr.msra.gmra.mrb[24].mxu1 %v1841_v19 }
 0x6b4   :  { %2011 = vmatpush1.bf16.msra.mxu0 %v3421_v45  ;;  %2054 = vmatpush1.bf16.msra.mxu1 %v3424_v46  ;;  %v2330_v45 = vld [vmem:[%s3700_s1 + $0x70] sm:$0xff] }
 0x6b5   :  { %2012 = vmatprep.subr.bf16.mxu0 %v3427_v47  ;;  %2055 = vmatprep.subr.bf16.mxu1 %v3430_v48 }
 0x6b6   :  { %2042 = vmatprep.mubr.bf16.mxu0 %v2939_v0  ;;  %2085 = vmatprep.mubr.bf16.mxu1 %v2939_v0  ;;  %v2331_v0 = vld [vmem:[%s3700_s1 + $0x78] sm:$0xff]  ;;  %s2941_s1 = smov [#allocation11]  }
 0x6b7   :  { %2162 = vperm.xlu1 %2470, %v2331_v0   ;;  %2157 = vperm.xlu0 %2469, %v2330_v45   ;;  %s2185_s12 = sshll.u32 %s2941_s1, 4  ;;  %s2186_s12 = int_to_ptr.vmem [resolvable:$true] %s2185_s12 }
 0x6b8   :  { %2013 = vmatpush1.bf16.msra.mxu0 %v3435_v49  ;;  %2056 = vmatpush1.bf16.msra.mxu1 %v3438_v50  ;;  %s2907_s13 = scalar_lea.vmem %s2186_s12, 256  ;;  %p2912_p3 = scmp.lt.s32.totalorder %s2186_s12, %s2186_s12 }
 0x6b9   :  { %2014 = vmatprep.subr.bf16.mxu0 %v3441_v51  ;;  %2057 = vmatprep.subr.bf16.mxu1 %v3444_v53  ;;  %p2908_p2 = scmp.ne.s32.totalorder %s2186_s12, %s2907_s13  ;;  %p2913_p4 = scmp.lt.s32.totalorder %s2907_s13, %s2907_s13 }
 0x6bb   :  { %p2914_p5 = por %p2913_p4, %p2912_p3 }
 0x6bc   :  { %2015 = vmatpush1.bf16.msra.mxu0 %v3447_v54  ;;  %2058 = vmatpush1.bf16.msra.mxu1 %v3450_v55 }
 0x6bd   :  { %2016 = vmatprep.subr.bf16.mxu0 %v3453_v56  ;;  %2059 = vmatprep.subr.bf16.mxu1 %v3456_v57  ;;  %p2915_p6 = pnand %p2914_p5, %p2908_p2 }
 0x6c0   :  { %2017 = vmatpush1.bf16.msra.mxu0 %v3459_v59  ;;  %2060 = vmatpush1.bf16.msra.mxu1 %v3462_v60 }
 0x6c1   :  { %2018 = vmatprep.subr.bf16.mxu0 %v3465_v61  ;;  %2061 = vmatprep.subr.bf16.mxu1 %v3468_v63 }
 0x6c4   :  { %2019 = vmatpush1.bf16.msra.mxu0 %v3471_v1  ;;  %2062 = vmatpush1.bf16.msra.mxu1 %v3474_v2 }
 0x6c5   :  { %2020 = vmatprep.subr.bf16.mxu0 %v3477_v3  ;;  %2063 = vmatprep.subr.bf16.mxu1 %v3480_v4 }
 0x6c8   :  { %2021 = vmatpush1.bf16.msra.mxu0 %v3483_v6  ;;  %2064 = vmatpush1.bf16.msra.mxu1 %v3486_v7 }
 0x6c9   :  { %2022 = vmatprep.subr.bf16.mxu0 %v3489_v32  ;;  %2065 = vmatprep.subr.bf16.mxu1 %v3492_v35 }
 0x6cc   :  { %2023 = vmatpush1.bf16.msra.mxu0 %v3495_v52  ;;  %2066 = vmatpush1.bf16.msra.mxu1 %v3498_v5 }
 0x6cd   :  { %2024 = vmatprep.subr.bf16.mxu0 %v3501_v62  ;;  %2067 = vmatprep.subr.bf16.mxu1 %v3504_v11 }
 0x6d0   :  { %2025 = vmatpush1.bf16.msra.mxu0 %v3507_v29  ;;  %2068 = vmatpush1.bf16.msra.mxu1 %v3510_v13 }
 0x786   :  { %v1876_v46 = vpop.f32.mrb[24].mxu0  ;;  %v1919_v47 = vpop.f32.mrb[24].mxu1 }
 0x787   :  { %v2356_v48 = vadd.f32 %v1876_v46, %v3189_v20  ;;  %v1878_v49 = vpop.f32.mrb[25].mxu0  ;;  %v1921_v50 = vpop.f32.mrb[25].mxu1  ;;  %v2388_v2 = vadd.f32 %v1919_v47, %v3196_v58 }
 0x788   :  { %v2357_v51 = vadd.f32 %v1878_v49, %v3191_v21  ;;  %v1880_v53 = vpop.f32.mrb[26].mxu0  ;;  %v1923_v54 = vpop.f32.mrb[26].mxu1  ;;  %v2389_v4 = vadd.f32 %v1921_v50, %v3199_v10 }
 0x789   :  { %v2316_v55 = vmul.f32 -1.442695, %v2356_v48  ;;  %v2358_v56 = vadd.f32 %v1880_v53, %v3189_v20  ;;  %v1882_v57 = vpop.f32.mrb[27].mxu0  ;;  %v1925_v59 = vpop.f32.mrb[27].mxu1  ;;  %v2390_v3 = vadd.f32 %v1923_v54, %v3196_v58  ;;  %v2318_v6 = vmul.f32 -1.442695, %v2388_v2 }
 0x78a   :  { %v2317_v60 = vmul.f32 -1.442695, %v2357_v51  ;;  %v2359_v61 = vadd.f32 %v1882_v57, %v3191_v21  ;;  %v2391_v35 = vadd.f32 %v1925_v59, %v3199_v10  ;;  %v1995_v46 = vpop.permute.xlu1 %1994 }
 0x78b   :  { %2767 = vpow2.f32 %v2316_v55  ;;  %v2319_v63 = vmul.f32 -1.442695, %v2358_v56  ;;  %v2321_v7 = vmul.f32 -1.442695, %v2390_v3 }
 0x78c   :  { %v2320_v1 = vmul.f32 -1.442695, %v2359_v61  ;;  %2769 = vpow2.f32 %v2317_v60 }
 0x78d   :  { %2771 = vpow2.f32 %v2319_v63 }
 0x78e   :  { %2773 = vpow2.f32 %v2320_v1 }
 0x78f   :  { %2775 = vtanh.f32 %v2389_v4 }
 0x790   :  { %2777 = vpow2.f32 %v2318_v6 }
 0x791   :  { %2779 = vpow2.f32 %v2321_v7 }
 0x795   :  { %v2768_v32 = vpop.eup %2767 }
 0x796   :  { %v1954_v52 = vadd.f32 1.0, %v2768_v32  ;;  %v2770_v5 = vpop.eup %2769 }
 0x797   :  { %v2772_v62 = vpop.eup %2771  ;;  %v1955_v11 = vadd.f32 1.0, %v2770_v5 }
 0x798   :  { %2781 = vrcp.f32 %v1954_v52  ;;  %v1957_v29 = vadd.f32 1.0, %v2772_v62  ;;  %v2774_v13 = vpop.eup %2773 }
 0x799   :  { %2783 = vtanh.f32 %v2391_v35  ;;  %v1958_v37 = vadd.f32 1.0, %v2774_v13  ;;  %v2776_v16 = vpop.eup %2775 }
 0x79a   :  { %2785 = vrcp.f32 %v1955_v11  ;;  %v2778_v27 = vpop.eup %2777 }
 0x79b   :  { %2787 = vrcp.f32 %v1957_v29  ;;  %v2780_v25 = vpop.eup %2779  ;;  %v1956_v23 = vadd.f32 1.0, %v2778_v27 }
 0x79c   :  { %2789 = vrcp.f32 %v1958_v37  ;;  %v1959_v24 = vadd.f32 1.0, %v2780_v25 }
 0x79d   :  { %2791 = vrcp.f32 %v1956_v23 }
 0x7a2   :  { %v2782_v28 = vpop.eup %2781 }
 0x7a3   :  { %v2784_v22 = vpop.eup %2783  ;;  %v1976_v12 = vmul.f32 %v2782_v28, %v2776_v16 }
 0x7a4   :  { %v2786_v17 = vpop.eup %2785 }
 0x7a5   :  { %v2788_v14 = vpop.eup %2787  ;;  %v1974_v40 = vmul.f32 %v2786_v17, %v3596_v31 }
 0x7a6   :  { %v1977_v42 = vmul.f32 %v2788_v14, %v2784_v22  ;;  %v2790_v39 = vpop.eup %2789 }
 0x7a7   :  { %v3658_v43 = vadd.f32 %v1976_v12, %v1974_v40  ;;  %v1975_v30 = vmul.f32 %v2790_v39, %v3600_v9  ;;  %v2792_v38 = vpop.eup %2791 }
 0x7a9   :  { %2793 = vtanh.f32 %v3658_v43  ;;  %v3662_v18 = vadd.f32 %v1977_v42, %v1975_v30 }
 0x7aa   :  { %2795 = vrcp.f32 %v1959_v24 }
 0x7ab   :  { %2797 = vtanh.f32 %v3662_v18 }
 0x7b3   :  { %v2794_v33 = vpop.eup %2793 }
 0x7b4   :  { %v1982_v19 = vmul.f32 %v2794_v33, %v2792_v38  ;;  %v2796_v31 = vpop.eup %2795  ;;  %v2158_v33 = vpop.permute.xlu0 %2157 }
 0x7b5   :  { %v2798_v0 = vpop.eup %2797 }
 0x7b6   :  { %v1997_v45 = vadd.f32 %v1990_v44, %v1982_v19  ;;  %v1983_v47 = vmul.f32 %v2798_v0, %v2796_v31 }
 0x7b8   :  { %v3668_v9 = vmax.f32 %v1831_v26, %v1997_v45  ;;  %v1998_v48 = vadd.f32 %v1995_v46, %v1983_v47  ;;  %v2009_v49 = vpack.c.bf16 %v1983_v47, %v1982_v19 }
 0x7ba   :  { %v3673_v50 = vmax.f32 %v1832_v15, %v1998_v48  ;;  %2043 = vmatmul.mubr.bf16.vlgmr.msra.gmra.mrb[28].mxu0 %v2009_v49  ;;  %2086 = vmatmul.mubr.bf16.vlgmr.msra.gmra.mrb[28].mxu1 %v2009_v49 }
 0x88d   :  { %v2044_v51 = vpop.f32.mrb[28].mxu0  ;;  %v2087_v53 = vpop.f32.mrb[28].mxu1 }
 0x88e   :  { %v2360_v54 = vadd.f32 %v2044_v51, %v3189_v20  ;;  %v2046_v55 = vpop.f32.mrb[29].mxu0  ;;  %v2089_v56 = vpop.f32.mrb[29].mxu1  ;;  %v2392_v1 = vadd.f32 %v2087_v53, %v3196_v58 }
 0x88f   :  { %v2361_v57 = vadd.f32 %v2046_v55, %v3191_v21  ;;  %v2048_v34 = vpop.f32.mrb[30].mxu0  ;;  %v2091_v41 = vpop.f32.mrb[30].mxu1  ;;  %v2393_v3 = vadd.f32 %v2089_v56, %v3199_v10 }
 0x890   :  { %v2324_v26 = vmul.f32 -1.442695, %v2360_v54  ;;  %v2362_v59 = vadd.f32 %v2048_v34, %v3189_v20  ;;  %v2050_v60 = vpop.f32.mrb[31].mxu0  ;;  %v2093_v61 = vpop.f32.mrb[31].mxu1  ;;  %v2394_v2 = vadd.f32 %v2091_v41, %v3196_v58  ;;  %v2326_v4 = vmul.f32 -1.442695, %v2392_v1 }
 0x891   :  { %v2325_v8 = vmul.f32 -1.442695, %v2361_v57  ;;  %v2363_v36 = vadd.f32 %v2050_v60, %v3191_v21  ;;  %v2395_v7 = vadd.f32 %v2093_v61, %v3199_v10 }
 0x892   :  { %2799 = vpow2.f32 %v2324_v26  ;;  %v2327_v15 = vmul.f32 -1.442695, %v2362_v59  ;;  %v2329_v6 = vmul.f32 -1.442695, %v2394_v2 }
 0x893   :  { %v2328_v63 = vmul.f32 -1.442695, %v2363_v36  ;;  %2801 = vpow2.f32 %v2325_v8 }
 0x894   :  { %2803 = vpow2.f32 %v2327_v15 }
 0x895   :  { %2805 = vpow2.f32 %v2328_v63 }
 0x896   :  { %2807 = vtanh.f32 %v2393_v3 }
 0x897   :  { %2809 = vpow2.f32 %v2326_v4 }
 0x898   :  { %2811 = vpow2.f32 %v2329_v6 }
 0x89c   :  { %v2800_v20 = vpop.eup %2799 }
 0x89d   :  { %v2122_v32 = vadd.f32 1.0, %v2800_v20  ;;  %v2802_v21 = vpop.eup %2801 }
 0x89e   :  { %v2804_v35 = vpop.eup %2803  ;;  %v2123_v52 = vadd.f32 1.0, %v2802_v21 }
 0x89f   :  { %2813 = vrcp.f32 %v2122_v32  ;;  %v2125_v5 = vadd.f32 1.0, %v2804_v35  ;;  %v2806_v62 = vpop.eup %2805 }
 0x8a0   :  { %2815 = vtanh.f32 %v2395_v7  ;;  %v2126_v58 = vadd.f32 1.0, %v2806_v62  ;;  %v2808_v11 = vpop.eup %2807 }
 0x8a1   :  { %2817 = vrcp.f32 %v2123_v52  ;;  %v2810_v29 = vpop.eup %2809 }
 0x8a2   :  { %2819 = vrcp.f32 %v2125_v5  ;;  %v2812_v13 = vpop.eup %2811  ;;  %v2124_v25 = vadd.f32 1.0, %v2810_v29 }
 0x8a3   :  { %2821 = vrcp.f32 %v2126_v58  ;;  %v2127_v23 = vadd.f32 1.0, %v2812_v13 }
 0x8a4   :  { %2823 = vrcp.f32 %v2124_v25 }
 0x8a9   :  { %v2814_v37 = vpop.eup %2813 }
 0x8aa   :  { %v2816_v16 = vpop.eup %2815  ;;  %v2144_v10 = vmul.f32 %v2814_v37, %v2808_v11 }
 0x8ab   :  { %v2818_v27 = vpop.eup %2817 }
 0x8ac   :  { %v2820_v28 = vpop.eup %2819  ;;  %v2142_v22 = vmul.f32 %v2818_v27, %v3658_v43  ;;  %v2163_v43 = vpop.permute.xlu1 %2162 }
 0x8ad   :  { %v2145_v12 = vmul.f32 %v2820_v28, %v2816_v16  ;;  %v2822_v17 = vpop.eup %2821 }
 0x8ae   :  { %v2146_v14 = vadd.f32 %v2144_v10, %v2142_v22  ;;  %v2143_v40 = vmul.f32 %v2822_v17, %v3662_v18  ;;  %v2824_v39 = vpop.eup %2823 }
 0x8b0   :  { %2825 = vtanh.f32 %v2146_v14  ;;  %v2147_v42 = vadd.f32 %v2145_v12, %v2143_v40 }
 0x8b1   :  { %2827 = vrcp.f32 %v2127_v23 }
 0x8b2   :  { %2829 = vtanh.f32 %v2147_v42 }
 0x8ba   :  { %v2826_v24 = vpop.eup %2825 }
 0x8bb   :  { %v2150_v30 = vmul.f32 %v2826_v24, %v2824_v39  ;;  %v2828_v38 = vpop.eup %2827 }
 0x8bc   :  { %v2830_v44 = vpop.eup %2829 }
 0x8bd   :  { %v2165_v19 = vadd.f32 %v2158_v33, %v2150_v30  ;;  %v2151_v31 = vmul.f32 %v2830_v44, %v2828_v38 }
 0x8bf   :  { %v2167_v0 = vmax.f32 %v3668_v9, %v2165_v19  ;;  %v2166_v45 = vadd.f32 %v2163_v43, %v2151_v31 }
 0x8c1   :  { %2178 = vst [vmem:[#allocation11] sm:$0xff] %v2167_v0  ;;  %v2168_v18 = vmax.f32 %v3673_v50, %v2166_v45 }
 0x8c3   :  { %2179 = vst [vmem:[#allocation11 + $0x8] sm:$0xff] %v2168_v18 }
 0x8c4   :  { %2918 = shalt.err (!%p2915_p6)
}
 0x8c5   :  { %s2919_s16 = scalar_lea.hbm %s3704_s5, 256 }
 0x8c6   :  { %p2920_p7 = scmp.ne.s32.totalorder %s3704_s5, %s2919_s16  ;;  %p2923_p8 = scmp.lt.u32.totalorder %s2919_s16, %s3704_s5 }
 0x8c8   :  { %p2925_p9 = pnand %p2923_p8, %p2920_p7 }
 0x8ca   :  { %2928 = shalt.err (!%p2925_p9)
}
 0x8cb   :  { %s2942_s18 = smov 128   ;;  %s2943_s19 = smov 8  }
 0x8cc   :  { %2191 = dma.vmem_to_hbm [thread:$0]  %s2186_s12, 256, %s3704_s5, [#allocation8], %s2942_s18, %s2942_s18, %s2943_s19  }
 0x8cd   :  { %2933 = dma.done.wait [#allocation8], 256  }
 0x8ce   :  { %2934 = vsyncadd [#allocation8], 4294967040 }
 0x8cf   :  { %2195 = vsyncpa [#allocation7], 1 }
 0x8d0   :  { %2196 = vsyncpa [#allocation10], 1 }
 0x8d1   :  { %2197 = vsyncpa [#allocation8], 1 }

</bundles_post_ra>
